<compile_context>
chip_gen: v5e
topology: v5e:2x2
jax: 0.10.0
libtpu: 0.0.40
codegen_flags: <defaults>
</compile_context>

<pallas_src>
import functools
import math

import jax
import jax.numpy as jnp
from jax.experimental import pallas as pl
from jax.experimental.pallas import tpu as pltpu


def _round_up(x, m):
    return ((x + m - 1) // m) * m


def _upsample_kernel(x_ref, w_ref, b_ref, re_ref, ro_ref, o_ref, *, tr, w_in):
    """One (image, row-tile) step of ConvTranspose2d(k=2, s=2).

    x_ref : (1, Cin, TR*W)      input pixels, row-major flat on the lane axis
    w_ref : (2, 2, Cout, Cin)   taps indexed (kh, kw)
    b_ref : (Cout, 1)           f32 bias
    re_ref: (W, 2W)             f32 0/1: input column w -> output column 2w
    ro_ref: (W, 2W)             f32 0/1: input column w -> output column 2w+1
    o_ref : (1, Cout, 2*TR, 2W) NCHW-interleaved output tile
    """
    x = x_ref[0]                      # (Cin, TM)
    bias = b_ref[...]                 # (Cout, 1) f32
    re = re_ref[...]                  # (W, 2W)  f32
    ro = ro_ref[...]                  # (W, 2W)  f32

    # Four tap matmuls, lane-dense over all TR*W pixels, f32 accumulation.
    taps = []
    for kh in range(2):
        for kw in range(2):
            t = jnp.dot(w_ref[kh, kw], x, preferred_element_type=jnp.float32)
            taps.append(t + bias)     # (Cout, TM) f32

    # Per input row: interleave kw=0 / kw=1 taps along lanes via two exact 0/1
    # matmuls, then store the two output rows (kh = 0, 1) of this input row.
    for r in range(tr):
        lo = r * w_in
        for kh in range(2):
            a = taps[2 * kh + 0][:, lo:lo + w_in]   # (Cout, W) -> even columns
            b = taps[2 * kh + 1][:, lo:lo + w_in]   # (Cout, W) -> odd columns
            row = (jnp.dot(a, re, preferred_element_type=jnp.float32)
                   + jnp.dot(b, ro, preferred_element_type=jnp.float32))
            o_ref[0, :, 2 * r + kh, :] = row.astype(o_ref.dtype)


def _vmem_estimate(tr, W, Cin, Cout, x_itemsize, w_itemsize):
    tm = tr * W
    b = 2 * _round_up(Cin, 8) * _round_up(tm, 128) * x_itemsize          # x in (2 bufs)
    b += 2 * Cout * _round_up(2 * tr, 8) * _round_up(2 * W, 128) * 4     # out (2 bufs)
    b += 4 * Cout * tm * 4                                               # live tap accumulators
    b += 2 * 4 * _round_up(Cout, 8) * _round_up(Cin, 128) * w_itemsize   # weights (2 bufs)
    b += 2 * (_round_up(Cout, 8) * 128 * 4
              + 2 * _round_up(W, 8) * _round_up(2 * W, 128) * 4)         # bias + Re/Ro
    return b


def _pick_row_tile(N, H, W, Cin, Cout, x_itemsize, w_itemsize,
                   vmem_budget, max_unroll=32):
    """Rows per grid step: TR*W % 128 == 0 and 2*TR % 8 == 0 (or TR == H)."""
    tr0 = 128 // math.gcd(W, 128)                 # smallest TR with TR*W % 128 == 0
    tr_unit = (tr0 * 4) // math.gcd(tr0, 4)       # lcm(tr0, 4) -> 2*TR % 8 == 0
    if tr_unit > min(H, max_unroll):
        # Whole-image row tile: block dims equal the full array dims (always legal).
        return H

    tr = (min(H, max_unroll) // tr_unit) * tr_unit
    while tr > tr_unit and _vmem_estimate(tr, W, Cin, Cout,
                                          x_itemsize, w_itemsize) > vmem_budget:
        tr -= tr_unit
    # Keep >= 4 parallel grid steps so both v7x TensorCores get balanced work.
    while tr > tr_unit and N * pl.cdiv(H, tr) < 4:
        tr -= tr_unit
    return tr


def upsample_conv_transpose2d(x, weight, bias, *, compute_dtype=jnp.bfloat16,
                              vmem_budget=20 << 20, max_unroll=32):
    """ConvTranspose2d with kernel_size=2, stride=2, padding=0.

    Args:
      x:      (N, Cin, H, W)      float32
      weight: (Cin, Cout, 2, 2)   float32  (PyTorch ConvTranspose2d layout)
      bias:   (Cout,)             float32
    Returns:
      (N, Cout, 2H, 2W) float32 (NCHW, written directly by the kernel)
    """
    N, Cin, H, W = x.shape
    Cin_w, Cout, KH, KW = weight.shape
    assert Cin == Cin_w and KH == 2 and KW == 2

    HW = H * W
    out_dtype = x.dtype

    # (N, Cin, H, W) -> (N, Cin, HW): free reshape; cast halves kernel input bytes
    # (fuses into the producer in a real network).
    x3 = x.reshape(N, Cin, HW).astype(compute_dtype)
    # (Cin, Cout, 2, 2) -> (2, 2, Cout, Cin): w4[kh, kw, co, ci] = weight[ci, co, kh, kw]
    w4 = jnp.transpose(weight, (2, 3, 1, 0)).astype(compute_dtype)
    b2 = bias.reshape(Cout, 1).astype(jnp.float32)

    # Exact 0/1 scatter matrices for the lane (kw) interleave.
    cols = jnp.arange(2 * W)[None, :]
    rows = jnp.arange(W)[:, None]
    re = (cols == 2 * rows).astype(jnp.float32)        # (W, 2W): w -> 2w
    ro = (cols == 2 * rows + 1).astype(jnp.float32)    # (W, 2W): w -> 2w+1

    x_item = jnp.dtype(compute_dtype).itemsize
    TR = _pick_row_tile(N, H, W, Cin, Cout, x_item, x_item, vmem_budget, max_unroll)
    TM = TR * W
    n_tiles = pl.cdiv(H, TR)

    kernel = functools.partial(_upsample_kernel, tr=TR, w_in=W)

    # Advisory cost model: 4 tap matmuls + per-row interleave matmuls.
    flops = 8 * N * HW * Cout * (Cin + 2 * W)
    bytes_accessed = (N * Cin * HW * x_item            # input
                      + 4 * Cout * Cin * x_item        # weights
                      + N * Cout * 4 * HW * 4)         # output (f32)
    cost = pl.CostEstimate(flops=flops, transcendentals=0,
                           bytes_accessed=bytes_accessed)

    est = _vmem_estimate(TR, W, Cin, Cout, x_item, x_item)
    # Safe on all generations: v5e/v6e have 128 MiB physical VMEM, v7x has 64 MiB.
    vmem_limit = int(min(48 << 20, max(32 << 20, est + (4 << 20))))

    y = pl.pallas_call(
        kernel,
        out_shape=jax.ShapeDtypeStruct((N, Cout, 2 * H, 2 * W), out_dtype),
        grid_spec=pltpu.PrefetchScalarGridSpec(
            num_scalar_prefetch=0,
            grid=(N, n_tiles),
            in_specs=[
                pl.BlockSpec((1, Cin, TM), lambda n, t: (n, 0, t)),
                pl.BlockSpec((2, 2, Cout, Cin), lambda n, t: (0, 0, 0, 0)),
                pl.BlockSpec((Cout, 1), lambda n, t: (0, 0)),
                pl.BlockSpec((W, 2 * W), lambda n, t: (0, 0)),
                pl.BlockSpec((W, 2 * W), lambda n, t: (0, 0)),
            ],
            out_specs=pl.BlockSpec((1, Cout, 2 * TR, 2 * W),
                                   lambda n, t: (n, 0, t, 0)),
        ),
        compiler_params=pltpu.CompilerParams(
            dimension_semantics=("parallel", "parallel"),
            vmem_limit_bytes=vmem_limit),
        cost_estimate=cost,
    )(x3, w4, b2, re, ro)
    return y


if __name__ == "__main__":
    key = jax.random.PRNGKey(0)
    k_x, k_w, k_b = jax.random.split(key, 3)

    N, Cin, H, W = 2, 4, 16, 16
    Cout = 8

    x = jax.random.normal(k_x, (N, Cin, H, W), dtype=jnp.float32)
    # Deterministic synthetic parameters (shapes match nn.ConvTranspose2d(Cin, Cout, 2, 2)).
    weight = jax.random.normal(k_w, (Cin, Cout, 2, 2), dtype=jnp.float32) * 0.1
    bias = jax.random.normal(k_b, (Cout,), dtype=jnp.float32) * 0.1

    out = upsample_conv_transpose2d(x, weight, bias)
    out = jax.block_until_ready(out)

    # Pure-JAX reference for the same ConvTranspose2d semantics.
    ref = jnp.einsum("nihw,iokl->nohkwl", x, weight).reshape(N, Cout, 2 * H, 2 * W)
    ref = ref + bias[None, :, None, None]

    assert out.shape == (N, Cout, 2 * H, 2 * W)
    # bf16 inputs with f32 accumulation -> slightly looser tolerance than pure f32.
    assert jnp.allclose(out, ref, atol=2e-2, rtol=2e-2)
    print("KERNEL_OK")
</pallas_src>

<mosaic_0001>
module attributes {stable_mosaic.version = 11 : i64} {
  func.func @_upsample_kernel(%arg0: i32, %arg1: i32, %arg2: memref<1x4x128xbf16, #tpu.memory_space<vmem>>, %arg3: memref<2x2x8x4xbf16, #tpu.memory_space<vmem>>, %arg4: memref<8x1xf32, #tpu.memory_space<vmem>>, %arg5: memref<16x32xf32, #tpu.memory_space<vmem>>, %arg6: memref<16x32xf32, #tpu.memory_space<vmem>>, %arg7: memref<1x8x16x32xf32, #tpu.memory_space<vmem>>) attributes {dimension_semantics = [#tpu.dimension_semantics<parallel>, #tpu.dimension_semantics<parallel>], iteration_bounds = array<i64: 2, 2>, scalar_prefetch = 0 : i64, scratch_operands = 0 : i64, tpu.core_type = #tpu.core_type<tc>, window_params = [{transform_indices = @transform_0, window_bounds = array<i64: 1, 4, 128>}, {pipeline_mode = #tpu.pipeline_mode<synchronous>, transform_indices = @transform_1, window_bounds = array<i64: 2, 2, 8, 4>}, {pipeline_mode = #tpu.pipeline_mode<synchronous>, transform_indices = @transform_2, window_bounds = array<i64: 8, 1>}, {pipeline_mode = #tpu.pipeline_mode<synchronous>, transform_indices = @transform_3, window_bounds = array<i64: 16, 32>}, {pipeline_mode = #tpu.pipeline_mode<synchronous>, transform_indices = @transform_4, window_bounds = array<i64: 16, 32>}, {transform_indices = @transform_5, window_bounds = array<i64: 1, 8, 16, 32>}]} {
    %c0 = arith.constant 0 : index
    %c0_0 = arith.constant 0 : index
    %c0_1 = arith.constant 0 : index
    %0 = vector.load %arg2[%c0, %c0_0, %c0_1] : memref<1x4x128xbf16, #tpu.memory_space<vmem>>, vector<1x4x128xbf16>
    %1 = vector.shape_cast %0 : vector<1x4x128xbf16> to vector<4x128xbf16>
    %c0_2 = arith.constant 0 : index
    %c0_3 = arith.constant 0 : index
    %2 = vector.load %arg4[%c0_2, %c0_3] : memref<8x1xf32, #tpu.memory_space<vmem>>, vector<8x1xf32>
    %c0_4 = arith.constant 0 : index
    %c0_5 = arith.constant 0 : index
    %3 = vector.load %arg5[%c0_4, %c0_5] : memref<16x32xf32, #tpu.memory_space<vmem>>, vector<16x32xf32>
    %c0_6 = arith.constant 0 : index
    %c0_7 = arith.constant 0 : index
    %4 = vector.load %arg6[%c0_6, %c0_7] : memref<16x32xf32, #tpu.memory_space<vmem>>, vector<16x32xf32>
    %c0_8 = arith.constant 0 : index
    %c0_9 = arith.constant 0 : index
    %c0_10 = arith.constant 0 : index
    %c0_11 = arith.constant 0 : index
    %5 = vector.load %arg3[%c0_8, %c0_9, %c0_10, %c0_11] : memref<2x2x8x4xbf16, #tpu.memory_space<vmem>>, vector<1x1x8x4xbf16>
    %6 = vector.shape_cast %5 : vector<1x1x8x4xbf16> to vector<8x4xbf16>
    %cst = arith.constant dense<0.000000e+00> : vector<8x128xf32>
    %7 = tpu.matmul %6, %1, %cst {dimension_numbers = #tpu.dot_dimension_numbers<[1], [0], [0], [1], [0, 0, 1, 1], [], []>} : vector<8x4xbf16>, vector<4x128xbf16>, vector<8x128xf32> -> vector<8x128xf32>
    %8 = vector.broadcast %2 : vector<8x1xf32> to vector<8x128xf32>
    %9 = arith.addf %7, %8 : vector<8x128xf32>
    %c0_12 = arith.constant 0 : index
    %c1 = arith.constant 1 : index
    %c0_13 = arith.constant 0 : index
    %c0_14 = arith.constant 0 : index
    %10 = vector.load %arg3[%c0_12, %c1, %c0_13, %c0_14] : memref<2x2x8x4xbf16, #tpu.memory_space<vmem>>, vector<1x1x8x4xbf16>
    %11 = vector.shape_cast %10 : vector<1x1x8x4xbf16> to vector<8x4xbf16>
    %cst_15 = arith.constant dense<0.000000e+00> : vector<8x128xf32>
    %12 = tpu.matmul %11, %1, %cst_15 {dimension_numbers = #tpu.dot_dimension_numbers<[1], [0], [0], [1], [0, 0, 1, 1], [], []>} : vector<8x4xbf16>, vector<4x128xbf16>, vector<8x128xf32> -> vector<8x128xf32>
    %13 = vector.broadcast %2 : vector<8x1xf32> to vector<8x128xf32>
    %14 = arith.addf %12, %13 : vector<8x128xf32>
    %c1_16 = arith.constant 1 : index
    %c0_17 = arith.constant 0 : index
    %c0_18 = arith.constant 0 : index
    %c0_19 = arith.constant 0 : index
    %15 = vector.load %arg3[%c1_16, %c0_17, %c0_18, %c0_19] : memref<2x2x8x4xbf16, #tpu.memory_space<vmem>>, vector<1x1x8x4xbf16>
    %16 = vector.shape_cast %15 : vector<1x1x8x4xbf16> to vector<8x4xbf16>
    %cst_20 = arith.constant dense<0.000000e+00> : vector<8x128xf32>
    %17 = tpu.matmul %16, %1, %cst_20 {dimension_numbers = #tpu.dot_dimension_numbers<[1], [0], [0], [1], [0, 0, 1, 1], [], []>} : vector<8x4xbf16>, vector<4x128xbf16>, vector<8x128xf32> -> vector<8x128xf32>
    %18 = vector.broadcast %2 : vector<8x1xf32> to vector<8x128xf32>
    %19 = arith.addf %17, %18 : vector<8x128xf32>
    %c1_21 = arith.constant 1 : index
    %c1_22 = arith.constant 1 : index
    %c0_23 = arith.constant 0 : index
    %c0_24 = arith.constant 0 : index
    %20 = vector.load %arg3[%c1_21, %c1_22, %c0_23, %c0_24] : memref<2x2x8x4xbf16, #tpu.memory_space<vmem>>, vector<1x1x8x4xbf16>
    %21 = vector.shape_cast %20 : vector<1x1x8x4xbf16> to vector<8x4xbf16>
    %cst_25 = arith.constant dense<0.000000e+00> : vector<8x128xf32>
    %22 = tpu.matmul %21, %1, %cst_25 {dimension_numbers = #tpu.dot_dimension_numbers<[1], [0], [0], [1], [0, 0, 1, 1], [], []>} : vector<8x4xbf16>, vector<4x128xbf16>, vector<8x128xf32> -> vector<8x128xf32>
    %23 = vector.broadcast %2 : vector<8x1xf32> to vector<8x128xf32>
    %24 = arith.addf %22, %23 : vector<8x128xf32>
    %25 = vector.extract_strided_slice %9 {offsets = [0, 0], sizes = [8, 16], strides = [1, 1]} : vector<8x128xf32> to vector<8x16xf32>
    %26 = vector.extract_strided_slice %14 {offsets = [0, 0], sizes = [8, 16], strides = [1, 1]} : vector<8x128xf32> to vector<8x16xf32>
    %cst_26 = arith.constant dense<0.000000e+00> : vector<8x32xf32>
    %27 = tpu.matmul %25, %3, %cst_26 {dimension_numbers = #tpu.dot_dimension_numbers<[1], [0], [0], [1], [0, 0, 1, 1], [], []>} : vector<8x16xf32>, vector<16x32xf32>, vector<8x32xf32> -> vector<8x32xf32>
    %cst_27 = arith.constant dense<0.000000e+00> : vector<8x32xf32>
    %28 = tpu.matmul %26, %4, %cst_27 {dimension_numbers = #tpu.dot_dimension_numbers<[1], [0], [0], [1], [0, 0, 1, 1], [], []>} : vector<8x16xf32>, vector<16x32xf32>, vector<8x32xf32> -> vector<8x32xf32>
    %29 = arith.addf %27, %28 : vector<8x32xf32>
    %c0_28 = arith.constant 0 : index
    %c0_29 = arith.constant 0 : index
    %c0_30 = arith.constant 0 : index
    %c0_31 = arith.constant 0 : index
    %30 = vector.load %arg7[%c0_28, %c0_29, %c0_30, %c0_31] : memref<1x8x16x32xf32, #tpu.memory_space<vmem>>, vector<1x8x1x32xf32>
    %31 = vector.shape_cast %30 : vector<1x8x1x32xf32> to vector<8x32xf32>
    %32 = vector.shape_cast %29 : vector<8x32xf32> to vector<1x8x1x32xf32>
    tpu.vector_store %arg7[%c0_28, %c0_29, %c0_30, %c0_31], %32 {strides = array<i32>} : memref<1x8x16x32xf32, #tpu.memory_space<vmem>>, vector<1x8x1x32xf32>,
    %33 = vector.extract_strided_slice %19 {offsets = [0, 0], sizes = [8, 16], strides = [1, 1]} : vector<8x128xf32> to vector<8x16xf32>
    %34 = vector.extract_strided_slice %24 {offsets = [0, 0], sizes = [8, 16], strides = [1, 1]} : vector<8x128xf32> to vector<8x16xf32>
    %cst_32 = arith.constant dense<0.000000e+00> : vector<8x32xf32>
    %35 = tpu.matmul %33, %3, %cst_32 {dimension_numbers = #tpu.dot_dimension_numbers<[1], [0], [0], [1], [0, 0, 1, 1], [], []>} : vector<8x16xf32>, vector<16x32xf32>, vector<8x32xf32> -> vector<8x32xf32>
    %cst_33 = arith.constant dense<0.000000e+00> : vector<8x32xf32>
    %36 = tpu.matmul %34, %4, %cst_33 {dimension_numbers = #tpu.dot_dimension_numbers<[1], [0], [0], [1], [0, 0, 1, 1], [], []>} : vector<8x16xf32>, vector<16x32xf32>, vector<8x32xf32> -> vector<8x32xf32>
    %37 = arith.addf %35, %36 : vector<8x32xf32>
    %c0_34 = arith.constant 0 : index
    %c0_35 = arith.constant 0 : index
    %c1_36 = arith.constant 1 : index
    %c0_37 = arith.constant 0 : index
    %38 = vector.load %arg7[%c0_34, %c0_35, %c1_36, %c0_37] : memref<1x8x16x32xf32, #tpu.memory_space<vmem>>, vector<1x8x1x32xf32>
    %39 = vector.shape_cast %38 : vector<1x8x1x32xf32> to vector<8x32xf32>
    %40 = vector.shape_cast %37 : vector<8x32xf32> to vector<1x8x1x32xf32>
    tpu.vector_store %arg7[%c0_34, %c0_35, %c1_36, %c0_37], %40 {strides = array<i32>} : memref<1x8x16x32xf32, #tpu.memory_space<vmem>>, vector<1x8x1x32xf32>,
    %41 = vector.extract_strided_slice %9 {offsets = [0, 16], sizes = [8, 16], strides = [1, 1]} : vector<8x128xf32> to vector<8x16xf32>
    %42 = vector.extract_strided_slice %14 {offsets = [0, 16], sizes = [8, 16], strides = [1, 1]} : vector<8x128xf32> to vector<8x16xf32>
    %cst_38 = arith.constant dense<0.000000e+00> : vector<8x32xf32>
    %43 = tpu.matmul %41, %3, %cst_38 {dimension_numbers = #tpu.dot_dimension_numbers<[1], [0], [0], [1], [0, 0, 1, 1], [], []>} : vector<8x16xf32>, vector<16x32xf32>, vector<8x32xf32> -> vector<8x32xf32>
    %cst_39 = arith.constant dense<0.000000e+00> : vector<8x32xf32>
    %44 = tpu.matmul %42, %4, %cst_39 {dimension_numbers = #tpu.dot_dimension_numbers<[1], [0], [0], [1], [0, 0, 1, 1], [], []>} : vector<8x16xf32>, vector<16x32xf32>, vector<8x32xf32> -> vector<8x32xf32>
    %45 = arith.addf %43, %44 : vector<8x32xf32>
    %c0_40 = arith.constant 0 : index
    %c0_41 = arith.constant 0 : index
    %c2 = arith.constant 2 : index
    %c0_42 = arith.constant 0 : index
    %46 = vector.load %arg7[%c0_40, %c0_41, %c2, %c0_42] : memref<1x8x16x32xf32, #tpu.memory_space<vmem>>, vector<1x8x1x32xf32>
    %47 = vector.shape_cast %46 : vector<1x8x1x32xf32> to vector<8x32xf32>
    %48 = vector.shape_cast %45 : vector<8x32xf32> to vector<1x8x1x32xf32>
    tpu.vector_store %arg7[%c0_40, %c0_41, %c2, %c0_42], %48 {strides = array<i32>} : memref<1x8x16x32xf32, #tpu.memory_space<vmem>>, vector<1x8x1x32xf32>,
    %49 = vector.extract_strided_slice %19 {offsets = [0, 16], sizes = [8, 16], strides = [1, 1]} : vector<8x128xf32> to vector<8x16xf32>
    %50 = vector.extract_strided_slice %24 {offsets = [0, 16], sizes = [8, 16], strides = [1, 1]} : vector<8x128xf32> to vector<8x16xf32>
    %cst_43 = arith.constant dense<0.000000e+00> : vector<8x32xf32>
    %51 = tpu.matmul %49, %3, %cst_43 {dimension_numbers = #tpu.dot_dimension_numbers<[1], [0], [0], [1], [0, 0, 1, 1], [], []>} : vector<8x16xf32>, vector<16x32xf32>, vector<8x32xf32> -> vector<8x32xf32>
    %cst_44 = arith.constant dense<0.000000e+00> : vector<8x32xf32>
    %52 = tpu.matmul %50, %4, %cst_44 {dimension_numbers = #tpu.dot_dimension_numbers<[1], [0], [0], [1], [0, 0, 1, 1], [], []>} : vector<8x16xf32>, vector<16x32xf32>, vector<8x32xf32> -> vector<8x32xf32>
    %53 = arith.addf %51, %52 : vector<8x32xf32>
    %c0_45 = arith.constant 0 : index
    %c0_46 = arith.constant 0 : index
    %c3 = arith.constant 3 : index
    %c0_47 = arith.constant 0 : index
    %54 = vector.load %arg7[%c0_45, %c0_46, %c3, %c0_47] : memref<1x8x16x32xf32, #tpu.memory_space<vmem>>, vector<1x8x1x32xf32>
    %55 = vector.shape_cast %54 : vector<1x8x1x32xf32> to vector<8x32xf32>
    %56 = vector.shape_cast %53 : vector<8x32xf32> to vector<1x8x1x32xf32>
    tpu.vector_store %arg7[%c0_45, %c0_46, %c3, %c0_47], %56 {strides = array<i32>} : memref<1x8x16x32xf32, #tpu.memory_space<vmem>>, vector<1x8x1x32xf32>,
    %57 = vector.extract_strided_slice %9 {offsets = [0, 32], sizes = [8, 16], strides = [1, 1]} : vector<8x128xf32> to vector<8x16xf32>
    %58 = vector.extract_strided_slice %14 {offsets = [0, 32], sizes = [8, 16], strides = [1, 1]} : vector<8x128xf32> to vector<8x16xf32>
    %cst_48 = arith.constant dense<0.000000e+00> : vector<8x32xf32>
    %59 = tpu.matmul %57, %3, %cst_48 {dimension_numbers = #tpu.dot_dimension_numbers<[1], [0], [0], [1], [0, 0, 1, 1], [], []>} : vector<8x16xf32>, vector<16x32xf32>, vector<8x32xf32> -> vector<8x32xf32>
    %cst_49 = arith.constant dense<0.000000e+00> : vector<8x32xf32>
    %60 = tpu.matmul %58, %4, %cst_49 {dimension_numbers = #tpu.dot_dimension_numbers<[1], [0], [0], [1], [0, 0, 1, 1], [], []>} : vector<8x16xf32>, vector<16x32xf32>, vector<8x32xf32> -> vector<8x32xf32>
    %61 = arith.addf %59, %60 : vector<8x32xf32>
    %c0_50 = arith.constant 0 : index
    %c0_51 = arith.constant 0 : index
    %c4 = arith.constant 4 : index
    %c0_52 = arith.constant 0 : index
    %62 = vector.load %arg7[%c0_50, %c0_51, %c4, %c0_52] : memref<1x8x16x32xf32, #tpu.memory_space<vmem>>, vector<1x8x1x32xf32>
    %63 = vector.shape_cast %62 : vector<1x8x1x32xf32> to vector<8x32xf32>
    %64 = vector.shape_cast %61 : vector<8x32xf32> to vector<1x8x1x32xf32>
    tpu.vector_store %arg7[%c0_50, %c0_51, %c4, %c0_52], %64 {strides = array<i32>} : memref<1x8x16x32xf32, #tpu.memory_space<vmem>>, vector<1x8x1x32xf32>,
    %65 = vector.extract_strided_slice %19 {offsets = [0, 32], sizes = [8, 16], strides = [1, 1]} : vector<8x128xf32> to vector<8x16xf32>
    %66 = vector.extract_strided_slice %24 {offsets = [0, 32], sizes = [8, 16], strides = [1, 1]} : vector<8x128xf32> to vector<8x16xf32>
    %cst_53 = arith.constant dense<0.000000e+00> : vector<8x32xf32>
    %67 = tpu.matmul %65, %3, %cst_53 {dimension_numbers = #tpu.dot_dimension_numbers<[1], [0], [0], [1], [0, 0, 1, 1], [], []>} : vector<8x16xf32>, vector<16x32xf32>, vector<8x32xf32> -> vector<8x32xf32>
    %cst_54 = arith.constant dense<0.000000e+00> : vector<8x32xf32>
    %68 = tpu.matmul %66, %4, %cst_54 {dimension_numbers = #tpu.dot_dimension_numbers<[1], [0], [0], [1], [0, 0, 1, 1], [], []>} : vector<8x16xf32>, vector<16x32xf32>, vector<8x32xf32> -> vector<8x32xf32>
    %69 = arith.addf %67, %68 : vector<8x32xf32>
    %c0_55 = arith.constant 0 : index
    %c0_56 = arith.constant 0 : index
    %c5 = arith.constant 5 : index
    %c0_57 = arith.constant 0 : index
    %70 = vector.load %arg7[%c0_55, %c0_56, %c5, %c0_57] : memref<1x8x16x32xf32, #tpu.memory_space<vmem>>, vector<1x8x1x32xf32>
    %71 = vector.shape_cast %70 : vector<1x8x1x32xf32> to vector<8x32xf32>
    %72 = vector.shape_cast %69 : vector<8x32xf32> to vector<1x8x1x32xf32>
    tpu.vector_store %arg7[%c0_55, %c0_56, %c5, %c0_57], %72 {strides = array<i32>} : memref<1x8x16x32xf32, #tpu.memory_space<vmem>>, vector<1x8x1x32xf32>,
    %73 = vector.extract_strided_slice %9 {offsets = [0, 48], sizes = [8, 16], strides = [1, 1]} : vector<8x128xf32> to vector<8x16xf32>
    %74 = vector.extract_strided_slice %14 {offsets = [0, 48], sizes = [8, 16], strides = [1, 1]} : vector<8x128xf32> to vector<8x16xf32>
    %cst_58 = arith.constant dense<0.000000e+00> : vector<8x32xf32>
    %75 = tpu.matmul %73, %3, %cst_58 {dimension_numbers = #tpu.dot_dimension_numbers<[1], [0], [0], [1], [0, 0, 1, 1], [], []>} : vector<8x16xf32>, vector<16x32xf32>, vector<8x32xf32> -> vector<8x32xf32>
    %cst_59 = arith.constant dense<0.000000e+00> : vector<8x32xf32>
    %76 = tpu.matmul %74, %4, %cst_59 {dimension_numbers = #tpu.dot_dimension_numbers<[1], [0], [0], [1], [0, 0, 1, 1], [], []>} : vector<8x16xf32>, vector<16x32xf32>, vector<8x32xf32> -> vector<8x32xf32>
    %77 = arith.addf %75, %76 : vector<8x32xf32>
    %c0_60 = arith.constant 0 : index
    %c0_61 = arith.constant 0 : index
    %c6 = arith.constant 6 : index
    %c0_62 = arith.constant 0 : index
    %78 = vector.load %arg7[%c0_60, %c0_61, %c6, %c0_62] : memref<1x8x16x32xf32, #tpu.memory_space<vmem>>, vector<1x8x1x32xf32>
    %79 = vector.shape_cast %78 : vector<1x8x1x32xf32> to vector<8x32xf32>
    %80 = vector.shape_cast %77 : vector<8x32xf32> to vector<1x8x1x32xf32>
    tpu.vector_store %arg7[%c0_60, %c0_61, %c6, %c0_62], %80 {strides = array<i32>} : memref<1x8x16x32xf32, #tpu.memory_space<vmem>>, vector<1x8x1x32xf32>,
    %81 = vector.extract_strided_slice %19 {offsets = [0, 48], sizes = [8, 16], strides = [1, 1]} : vector<8x128xf32> to vector<8x16xf32>
    %82 = vector.extract_strided_slice %24 {offsets = [0, 48], sizes = [8, 16], strides = [1, 1]} : vector<8x128xf32> to vector<8x16xf32>
    %cst_63 = arith.constant dense<0.000000e+00> : vector<8x32xf32>
    %83 = tpu.matmul %81, %3, %cst_63 {dimension_numbers = #tpu.dot_dimension_numbers<[1], [0], [0], [1], [0, 0, 1, 1], [], []>} : vector<8x16xf32>, vector<16x32xf32>, vector<8x32xf32> -> vector<8x32xf32>
    %cst_64 = arith.constant dense<0.000000e+00> : vector<8x32xf32>
    %84 = tpu.matmul %82, %4, %cst_64 {dimension_numbers = #tpu.dot_dimension_numbers<[1], [0], [0], [1], [0, 0, 1, 1], [], []>} : vector<8x16xf32>, vector<16x32xf32>, vector<8x32xf32> -> vector<8x32xf32>
    %85 = arith.addf %83, %84 : vector<8x32xf32>
    %c0_65 = arith.constant 0 : index
    %c0_66 = arith.constant 0 : index
    %c7 = arith.constant 7 : index
    %c0_67 = arith.constant 0 : index
    %86 = vector.load %arg7[%c0_65, %c0_66, %c7, %c0_67] : memref<1x8x16x32xf32, #tpu.memory_space<vmem>>, vector<1x8x1x32xf32>
    %87 = vector.shape_cast %86 : vector<1x8x1x32xf32> to vector<8x32xf32>
    %88 = vector.shape_cast %85 : vector<8x32xf32> to vector<1x8x1x32xf32>
    tpu.vector_store %arg7[%c0_65, %c0_66, %c7, %c0_67], %88 {strides = array<i32>} : memref<1x8x16x32xf32, #tpu.memory_space<vmem>>, vector<1x8x1x32xf32>,
    %89 = vector.extract_strided_slice %9 {offsets = [0, 64], sizes = [8, 16], strides = [1, 1]} : vector<8x128xf32> to vector<8x16xf32>
    %90 = vector.extract_strided_slice %14 {offsets = [0, 64], sizes = [8, 16], strides = [1, 1]} : vector<8x128xf32> to vector<8x16xf32>
    %cst_68 = arith.constant dense<0.000000e+00> : vector<8x32xf32>
    %91 = tpu.matmul %89, %3, %cst_68 {dimension_numbers = #tpu.dot_dimension_numbers<[1], [0], [0], [1], [0, 0, 1, 1], [], []>} : vector<8x16xf32>, vector<16x32xf32>, vector<8x32xf32> -> vector<8x32xf32>
    %cst_69 = arith.constant dense<0.000000e+00> : vector<8x32xf32>
    %92 = tpu.matmul %90, %4, %cst_69 {dimension_numbers = #tpu.dot_dimension_numbers<[1], [0], [0], [1], [0, 0, 1, 1], [], []>} : vector<8x16xf32>, vector<16x32xf32>, vector<8x32xf32> -> vector<8x32xf32>
    %93 = arith.addf %91, %92 : vector<8x32xf32>
    %c0_70 = arith.constant 0 : index
    %c0_71 = arith.constant 0 : index
    %c8 = arith.constant 8 : index
    %c0_72 = arith.constant 0 : index
    %94 = vector.load %arg7[%c0_70, %c0_71, %c8, %c0_72] : memref<1x8x16x32xf32, #tpu.memory_space<vmem>>, vector<1x8x1x32xf32>
    %95 = vector.shape_cast %94 : vector<1x8x1x32xf32> to vector<8x32xf32>
    %96 = vector.shape_cast %93 : vector<8x32xf32> to vector<1x8x1x32xf32>
    tpu.vector_store %arg7[%c0_70, %c0_71, %c8, %c0_72], %96 {strides = array<i32>} : memref<1x8x16x32xf32, #tpu.memory_space<vmem>>, vector<1x8x1x32xf32>,
    %97 = vector.extract_strided_slice %19 {offsets = [0, 64], sizes = [8, 16], strides = [1, 1]} : vector<8x128xf32> to vector<8x16xf32>
    %98 = vector.extract_strided_slice %24 {offsets = [0, 64], sizes = [8, 16], strides = [1, 1]} : vector<8x128xf32> to vector<8x16xf32>
    %cst_73 = arith.constant dense<0.000000e+00> : vector<8x32xf32>
    %99 = tpu.matmul %97, %3, %cst_73 {dimension_numbers = #tpu.dot_dimension_numbers<[1], [0], [0], [1], [0, 0, 1, 1], [], []>} : vector<8x16xf32>, vector<16x32xf32>, vector<8x32xf32> -> vector<8x32xf32>
    %cst_74 = arith.constant dense<0.000000e+00> : vector<8x32xf32>
    %100 = tpu.matmul %98, %4, %cst_74 {dimension_numbers = #tpu.dot_dimension_numbers<[1], [0], [0], [1], [0, 0, 1, 1], [], []>} : vector<8x16xf32>, vector<16x32xf32>, vector<8x32xf32> -> vector<8x32xf32>
    %101 = arith.addf %99, %100 : vector<8x32xf32>
    %c0_75 = arith.constant 0 : index
    %c0_76 = arith.constant 0 : index
    %c9 = arith.constant 9 : index
    %c0_77 = arith.constant 0 : index
    %102 = vector.load %arg7[%c0_75, %c0_76, %c9, %c0_77] : memref<1x8x16x32xf32, #tpu.memory_space<vmem>>, vector<1x8x1x32xf32>
    %103 = vector.shape_cast %102 : vector<1x8x1x32xf32> to vector<8x32xf32>
    %104 = vector.shape_cast %101 : vector<8x32xf32> to vector<1x8x1x32xf32>
    tpu.vector_store %arg7[%c0_75, %c0_76, %c9, %c0_77], %104 {strides = array<i32>} : memref<1x8x16x32xf32, #tpu.memory_space<vmem>>, vector<1x8x1x32xf32>,
    %105 = vector.extract_strided_slice %9 {offsets = [0, 80], sizes = [8, 16], strides = [1, 1]} : vector<8x128xf32> to vector<8x16xf32>
    %106 = vector.extract_strided_slice %14 {offsets = [0, 80], sizes = [8, 16], strides = [1, 1]} : vector<8x128xf32> to vector<8x16xf32>
    %cst_78 = arith.constant dense<0.000000e+00> : vector<8x32xf32>
    %107 = tpu.matmul %105, %3, %cst_78 {dimension_numbers = #tpu.dot_dimension_numbers<[1], [0], [0], [1], [0, 0, 1, 1], [], []>} : vector<8x16xf32>, vector<16x32xf32>, vector<8x32xf32> -> vector<8x32xf32>
    %cst_79 = arith.constant dense<0.000000e+00> : vector<8x32xf32>
    %108 = tpu.matmul %106, %4, %cst_79 {dimension_numbers = #tpu.dot_dimension_numbers<[1], [0], [0], [1], [0, 0, 1, 1], [], []>} : vector<8x16xf32>, vector<16x32xf32>, vector<8x32xf32> -> vector<8x32xf32>
    %109 = arith.addf %107, %108 : vector<8x32xf32>
    %c0_80 = arith.constant 0 : index
    %c0_81 = arith.constant 0 : index
    %c10 = arith.constant 10 : index
    %c0_82 = arith.constant 0 : index
    %110 = vector.load %arg7[%c0_80, %c0_81, %c10, %c0_82] : memref<1x8x16x32xf32, #tpu.memory_space<vmem>>, vector<1x8x1x32xf32>
    %111 = vector.shape_cast %110 : vector<1x8x1x32xf32> to vector<8x32xf32>
    %112 = vector.shape_cast %109 : vector<8x32xf32> to vector<1x8x1x32xf32>
    tpu.vector_store %arg7[%c0_80, %c0_81, %c10, %c0_82], %112 {strides = array<i32>} : memref<1x8x16x32xf32, #tpu.memory_space<vmem>>, vector<1x8x1x32xf32>,
    %113 = vector.extract_strided_slice %19 {offsets = [0, 80], sizes = [8, 16], strides = [1, 1]} : vector<8x128xf32> to vector<8x16xf32>
    %114 = vector.extract_strided_slice %24 {offsets = [0, 80], sizes = [8, 16], strides = [1, 1]} : vector<8x128xf32> to vector<8x16xf32>
    %cst_83 = arith.constant dense<0.000000e+00> : vector<8x32xf32>
    %115 = tpu.matmul %113, %3, %cst_83 {dimension_numbers = #tpu.dot_dimension_numbers<[1], [0], [0], [1], [0, 0, 1, 1], [], []>} : vector<8x16xf32>, vector<16x32xf32>, vector<8x32xf32> -> vector<8x32xf32>
    %cst_84 = arith.constant dense<0.000000e+00> : vector<8x32xf32>
    %116 = tpu.matmul %114, %4, %cst_84 {dimension_numbers = #tpu.dot_dimension_numbers<[1], [0], [0], [1], [0, 0, 1, 1], [], []>} : vector<8x16xf32>, vector<16x32xf32>, vector<8x32xf32> -> vector<8x32xf32>
    %117 = arith.addf %115, %116 : vector<8x32xf32>
    %c0_85 = arith.constant 0 : index
    %c0_86 = arith.constant 0 : index
    %c11 = arith.constant 11 : index
    %c0_87 = arith.constant 0 : index
    %118 = vector.load %arg7[%c0_85, %c0_86, %c11, %c0_87] : memref<1x8x16x32xf32, #tpu.memory_space<vmem>>, vector<1x8x1x32xf32>
    %119 = vector.shape_cast %118 : vector<1x8x1x32xf32> to vector<8x32xf32>
    %120 = vector.shape_cast %117 : vector<8x32xf32> to vector<1x8x1x32xf32>
    tpu.vector_store %arg7[%c0_85, %c0_86, %c11, %c0_87], %120 {strides = array<i32>} : memref<1x8x16x32xf32, #tpu.memory_space<vmem>>, vector<1x8x1x32xf32>,
    %121 = vector.extract_strided_slice %9 {offsets = [0, 96], sizes = [8, 16], strides = [1, 1]} : vector<8x128xf32> to vector<8x16xf32>
    %122 = vector.extract_strided_slice %14 {offsets = [0, 96], sizes = [8, 16], strides = [1, 1]} : vector<8x128xf32> to vector<8x16xf32>
    %cst_88 = arith.constant dense<0.000000e+00> : vector<8x32xf32>
    %123 = tpu.matmul %121, %3, %cst_88 {dimension_numbers = #tpu.dot_dimension_numbers<[1], [0], [0], [1], [0, 0, 1, 1], [], []>} : vector<8x16xf32>, vector<16x32xf32>, vector<8x32xf32> -> vector<8x32xf32>
    %cst_89 = arith.constant dense<0.000000e+00> : vector<8x32xf32>
    %124 = tpu.matmul %122, %4, %cst_89 {dimension_numbers = #tpu.dot_dimension_numbers<[1], [0], [0], [1], [0, 0, 1, 1], [], []>} : vector<8x16xf32>, vector<16x32xf32>, vector<8x32xf32> -> vector<8x32xf32>
    %125 = arith.addf %123, %124 : vector<8x32xf32>
    %c0_90 = arith.constant 0 : index
    %c0_91 = arith.constant 0 : index
    %c12 = arith.constant 12 : index
    %c0_92 = arith.constant 0 : index
    %126 = vector.load %arg7[%c0_90, %c0_91, %c12, %c0_92] : memref<1x8x16x32xf32, #tpu.memory_space<vmem>>, vector<1x8x1x32xf32>
    %127 = vector.shape_cast %126 : vector<1x8x1x32xf32> to vector<8x32xf32>
    %128 = vector.shape_cast %125 : vector<8x32xf32> to vector<1x8x1x32xf32>
    tpu.vector_store %arg7[%c0_90, %c0_91, %c12, %c0_92], %128 {strides = array<i32>} : memref<1x8x16x32xf32, #tpu.memory_space<vmem>>, vector<1x8x1x32xf32>,
    %129 = vector.extract_strided_slice %19 {offsets = [0, 96], sizes = [8, 16], strides = [1, 1]} : vector<8x128xf32> to vector<8x16xf32>
    %130 = vector.extract_strided_slice %24 {offsets = [0, 96], sizes = [8, 16], strides = [1, 1]} : vector<8x128xf32> to vector<8x16xf32>
    %cst_93 = arith.constant dense<0.000000e+00> : vector<8x32xf32>
    %131 = tpu.matmul %129, %3, %cst_93 {dimension_numbers = #tpu.dot_dimension_numbers<[1], [0], [0], [1], [0, 0, 1, 1], [], []>} : vector<8x16xf32>, vector<16x32xf32>, vector<8x32xf32> -> vector<8x32xf32>
    %cst_94 = arith.constant dense<0.000000e+00> : vector<8x32xf32>
    %132 = tpu.matmul %130, %4, %cst_94 {dimension_numbers = #tpu.dot_dimension_numbers<[1], [0], [0], [1], [0, 0, 1, 1], [], []>} : vector<8x16xf32>, vector<16x32xf32>, vector<8x32xf32> -> vector<8x32xf32>
    %133 = arith.addf %131, %132 : vector<8x32xf32>
    %c0_95 = arith.constant 0 : index
    %c0_96 = arith.constant 0 : index
    %c13 = arith.constant 13 : index
    %c0_97 = arith.constant 0 : index
    %134 = vector.load %arg7[%c0_95, %c0_96, %c13, %c0_97] : memref<1x8x16x32xf32, #tpu.memory_space<vmem>>, vector<1x8x1x32xf32>
    %135 = vector.shape_cast %134 : vector<1x8x1x32xf32> to vector<8x32xf32>
    %136 = vector.shape_cast %133 : vector<8x32xf32> to vector<1x8x1x32xf32>
    tpu.vector_store %arg7[%c0_95, %c0_96, %c13, %c0_97], %136 {strides = array<i32>} : memref<1x8x16x32xf32, #tpu.memory_space<vmem>>, vector<1x8x1x32xf32>,
    %137 = vector.extract_strided_slice %9 {offsets = [0, 112], sizes = [8, 16], strides = [1, 1]} : vector<8x128xf32> to vector<8x16xf32>
    %138 = vector.extract_strided_slice %14 {offsets = [0, 112], sizes = [8, 16], strides = [1, 1]} : vector<8x128xf32> to vector<8x16xf32>
    %cst_98 = arith.constant dense<0.000000e+00> : vector<8x32xf32>
    %139 = tpu.matmul %137, %3, %cst_98 {dimension_numbers = #tpu.dot_dimension_numbers<[1], [0], [0], [1], [0, 0, 1, 1], [], []>} : vector<8x16xf32>, vector<16x32xf32>, vector<8x32xf32> -> vector<8x32xf32>
    %cst_99 = arith.constant dense<0.000000e+00> : vector<8x32xf32>
    %140 = tpu.matmul %138, %4, %cst_99 {dimension_numbers = #tpu.dot_dimension_numbers<[1], [0], [0], [1], [0, 0, 1, 1], [], []>} : vector<8x16xf32>, vector<16x32xf32>, vector<8x32xf32> -> vector<8x32xf32>
    %141 = arith.addf %139, %140 : vector<8x32xf32>
    %c0_100 = arith.constant 0 : index
    %c0_101 = arith.constant 0 : index
    %c14 = arith.constant 14 : index
    %c0_102 = arith.constant 0 : index
    %142 = vector.load %arg7[%c0_100, %c0_101, %c14, %c0_102] : memref<1x8x16x32xf32, #tpu.memory_space<vmem>>, vector<1x8x1x32xf32>
    %143 = vector.shape_cast %142 : vector<1x8x1x32xf32> to vector<8x32xf32>
    %144 = vector.shape_cast %141 : vector<8x32xf32> to vector<1x8x1x32xf32>
    tpu.vector_store %arg7[%c0_100, %c0_101, %c14, %c0_102], %144 {strides = array<i32>} : memref<1x8x16x32xf32, #tpu.memory_space<vmem>>, vector<1x8x1x32xf32>,
    %145 = vector.extract_strided_slice %19 {offsets = [0, 112], sizes = [8, 16], strides = [1, 1]} : vector<8x128xf32> to vector<8x16xf32>
    %146 = vector.extract_strided_slice %24 {offsets = [0, 112], sizes = [8, 16], strides = [1, 1]} : vector<8x128xf32> to vector<8x16xf32>
    %cst_103 = arith.constant dense<0.000000e+00> : vector<8x32xf32>
    %147 = tpu.matmul %145, %3, %cst_103 {dimension_numbers = #tpu.dot_dimension_numbers<[1], [0], [0], [1], [0, 0, 1, 1], [], []>} : vector<8x16xf32>, vector<16x32xf32>, vector<8x32xf32> -> vector<8x32xf32>
    %cst_104 = arith.constant dense<0.000000e+00> : vector<8x32xf32>
    %148 = tpu.matmul %146, %4, %cst_104 {dimension_numbers = #tpu.dot_dimension_numbers<[1], [0], [0], [1], [0, 0, 1, 1], [], []>} : vector<8x16xf32>, vector<16x32xf32>, vector<8x32xf32> -> vector<8x32xf32>
    %149 = arith.addf %147, %148 : vector<8x32xf32>
    %c0_105 = arith.constant 0 : index
    %c0_106 = arith.constant 0 : index
    %c15 = arith.constant 15 : index
    %c0_107 = arith.constant 0 : index
    %150 = vector.load %arg7[%c0_105, %c0_106, %c15, %c0_107] : memref<1x8x16x32xf32, #tpu.memory_space<vmem>>, vector<1x8x1x32xf32>
    %151 = vector.shape_cast %150 : vector<1x8x1x32xf32> to vector<8x32xf32>
    %152 = vector.shape_cast %149 : vector<8x32xf32> to vector<1x8x1x32xf32>
    tpu.vector_store %arg7[%c0_105, %c0_106, %c15, %c0_107], %152 {strides = array<i32>} : memref<1x8x16x32xf32, #tpu.memory_space<vmem>>, vector<1x8x1x32xf32>,
    return
  }
  func.func @transform_0(%arg0: i32, %arg1: i32) -> (i32, i32, i32) {
    %c0_i32 = arith.constant 0 : i32
    %c0_i32_0 = arith.constant 0 : i32
    return %arg0, %c0_i32, %arg1 : i32, i32, i32
  }
  func.func @transform_1(%arg0: i32, %arg1: i32) -> (i32, i32, i32, i32) {
    %c0_i32 = arith.constant 0 : i32
    %c0_i32_0 = arith.constant 0 : i32
    %c0_i32_1 = arith.constant 0 : i32
    %c0_i32_2 = arith.constant 0 : i32
    %c0_i32_3 = arith.constant 0 : i32
    return %c0_i32, %c0_i32_0, %c0_i32_1, %c0_i32_2 : i32, i32, i32, i32
  }
  func.func @transform_2(%arg0: i32, %arg1: i32) -> (i32, i32) {
    %c0_i32 = arith.constant 0 : i32
    %c0_i32_0 = arith.constant 0 : i32
    %c0_i32_1 = arith.constant 0 : i32
    return %c0_i32, %c0_i32_0 : i32, i32
  }
  func.func @transform_3(%arg0: i32, %arg1: i32) -> (i32, i32) {
    %c0_i32 = arith.constant 0 : i32
    %c0_i32_0 = arith.constant 0 : i32
    %c0_i32_1 = arith.constant 0 : i32
    return %c0_i32, %c0_i32_0 : i32, i32
  }
  func.func @transform_4(%arg0: i32, %arg1: i32) -> (i32, i32) {
    %c0_i32 = arith.constant 0 : i32
    %c0_i32_0 = arith.constant 0 : i32
    %c0_i32_1 = arith.constant 0 : i32
    return %c0_i32, %c0_i32_0 : i32, i32
  }
  func.func @transform_5(%arg0: i32, %arg1: i32) -> (i32, i32, i32, i32) {
    %c0_i32 = arith.constant 0 : i32
    %c0_i32_0 = arith.constant 0 : i32
    %c0_i32_1 = arith.constant 0 : i32
    return %arg0, %c0_i32, %arg1, %c0_i32_0 : i32, i32, i32, i32
  }
}

</mosaic_0001>

<bundles_post_ra>
// kernel: tpu_custom_call.1
= control target key start
LH: loop header
LB: loop body
LE: loop exit
PB: predicated region body
PF: predicated region fallthrough
CT: control target
= control target key end

     0   :  { %10 = vsyncpa [#allocation3], 0  ;;  %s2456_s0 = inlined_call_operand.hbm [shape: bf16[2,4,256], index: 0, kind: input, shape index: {}]   ;;  %s2457_s1 = inlined_call_operand.vmem [shape: bf16[2,2,8,4], index: 1, kind: input, shape index: {}]   ;;  %s2458_s2 = inlined_call_operand.vmem [shape: f32[8,1], index: 2, kind: input, shape index: {}]   ;;  %s2459_s3 = inlined_call_operand.vmem [shape: f32[16,32], index: 3, kind: input, shape index: {}]   ;;  %s2460_s4 = inlined_call_operand.vmem [shape: f32[16,32], index: 4, kind: input, shape index: {}]   ;;  %s2461_s5 = inlined_call_operand.hbm [shape: f32[2,8,32,32], index: 5, kind: output, shape index: {}]  }
   0x1   :  { %12 = vsyncpa [#allocation3 + $0x1], 0 }
   0x2   :  { %13 = vsyncpa [#allocation4], 0 }
   0x3   :  { %15 = vsyncpa [#allocation4 + $0x1], 0  ;;  %s1915_s18 = smov 0   ;;  %s1917_s19 = smov 0  }
   0x4   :  { %s1919_s20 = smov 0   ;;  %s1921_s21 = smov 0  }
   0x5   :  { %s1923_s22 = smov 0   ;;  %s1925_s23 = smov 0  }
   0x6   :  { %s1927_s24 = smov 0   ;;  %s1929_s25 = smov 0  }
   0x7 LB: > { %s1613_s26 = sadd.s32 4294967295, %s1868_s25   ;;  %s1614_s27 = sadd.s32 4294967294, %s1868_s25   ;;  %s1868_s25 = sphi %s1929_s25, %s21_s25   ;;  %s1864_s24 = sphi %s1927_s24, %s2481_s24   ;;  %s1860_s23 = sphi %s1925_s23, %s2480_s23   ;;  %s1856_s22 = sphi %s1923_s22, %s2479_s22   ;;  %s1852_s21 = sphi %s1921_s21, %s2478_s21   ;;  %s1848_s20 = sphi %s1919_s20, %s2477_s20   ;;  %s1844_s19 = sphi %s1917_s19, %s2476_s19   ;;  %s1840_s18 = sphi %s1915_s18, %s2475_s18  }
   0x8   : > { %s30_s28 = sadd.s32 1, %s1860_s23  ;;  %s33_s29 = sadd.s32 1, %s1864_s24 }
   0x9   : > { %p31_p0 = scmp.ge.s32.totalorder %s30_s28, 2  ;;  %s42_s30 = sadd.s32 1, %s1848_s20 }
   0xa   : > { %p49_p1 = scmp.ne.s32.totalorder %s1848_s20, %s1844_s19  ;;  %p50_p2 = scmp.eq.s32.totalorder %s1868_s25, 0 }
   0xb   : > { %s2483_s28 = smov (%p31_p0, %s30_s28), 0  ;;  %s2485_s29 = smov (!%p31_p0, %s33_s29), %s1864_s24 }
   0xc   : > { %2465 = sst [smem:[#allocation10_spill]] %s2483_s28  ;;  %s38_s6 = ssub.s32 %s1860_s23, %s2483_s28 }
   0xd   : > { %p1968_p3 = por %p50_p2, %p49_p1  ;;  %p35_p4 = scmp.ge.s32.totalorder %s2485_s29, 2 }
   0xe   : > { %p55_p5 = scmp.ne.s32.totalorder %s1844_s19, %s1840_s18  ;;  %p56_p6 = scmp.eq.s32.totalorder %s1613_s26, 0 }
   0xf   : > { %p165_p7 = scmp.eq.s32.totalorder %s1613_s26, 3  ;;  %s2487_s29 = smov (%p35_p4, %s2485_s29), 0 }
  0x10   : > { %2467 = sst [smem:[#allocation11_spill]] %s2487_s29  ;;  %p1976_p8 = por %p56_p6, %p55_p5 }
  0x11   : > { %p1980_p9 = por %p165_p7, %p49_p1  ;;  %s37_s10 = ssub.s32 %s1864_s24, %s2487_s29 }
  0x12   : > { %p171_p10 = scmp.eq.s32.totalorder %s1614_s27, 3  ;;  %s39_s11 = sor.u32 %s38_s6, %s37_s10 }
  0x13   : > { %p40_p11 = scmp.eq.s32.totalorder %s39_s11, 0  ;;  %p1686_p13 = scmp.lt.s32.totalorder %s1868_s25, 4 }
  0x14   : > { %p1986_p12 = por %p171_p10, %p55_p5  ;;  %s203_s13 = sand.u32 1, %s1848_s20  }
  0x15   : > { %s1993_s14 = scalar_select %p40_p11, %s1848_s20, %s42_s30  }
  0x16   : > { %s2470_s12 = scalar_select %p1986_p12, 1, 0 }
  0x17   : > { %s1617_s15 = sshll.u32 %s203_s13, 1  ;;  %s1618_s16 = sshll.u32 %s1864_s24, 1 }
  0x18   : > { %2471 = sst [smem:[#allocation12_spill]] %s2470_s12  ;;  %s211_s17 = sadd.s32 %s1860_s23, %s1618_s16 }
  0x19   : > { %s207_s26 = scalar_lea.vmem [#allocation2], %s1617_s15  ;;  %s1619_s29 = sshll.u32 %s211_s17, 1 }
  0x1a   : > { %s217_s28 = sshll.u32 %s207_s26, 4  ;;  %s213_s10 = scalar_lea.hbm %s2456_s0, %s1619_s29  ;;  %s218_s28 = int_to_ptr.vmem [resolvable:$true] %s217_s28 }
  0x1b   : > { %p1679_p0 = pnand %p1686_p13, %p1968_p3  ;;  %s215_s11 = sshll.u32 %s213_s10, 4  ;;  %s216_s11 = int_to_ptr.hbm [resolvable:$true] %s215_s11 }
  0x1c   : > { %p1620_p1 = scmp.ge.s32.totalorder %s1868_s25, 1  ;;  %s204_s12 = scalar_lea.sflag [#allocation3], %s203_s13 }
  0x1d   : > { %1681 = dma.hbm_to_vmem [thread:$0]  (!%p1679_p0), %s216_s11, 32, %s218_s28, %s204_s12  }
  0x1e   : > { %p222_p2 = scmp.lt.s32.totalorder %s1868_s25, 5 }
  0x20   : > { %p223_p4 = pnand %p1620_p1, %p222_p2 }
  0x21   : > { %s2005_s30 = sand.u32 (!%p223_p4), 1, %s1844_s19  }
  0x22   : > { %226 = sbr.rel (%p223_p4) target bundleno = 540 (0x21c), region = 40  ;;  %s1621_s15 = sshll.u32 (!%p223_p4), %s2005_s30, 1 }
  0x23   : > { %s229_s16 = scalar_lea.sflag (!%p223_p4), [#allocation3], %s2005_s30  ;;  %s232_s17 = scalar_lea.vmem (!%p223_p4), [#allocation2], %s1621_s15 }
  0x27   : > { %1831 = dma.done.wait (%p1976_p8), %s229_s16, 32  }
  0x28   : > { %1833 = vsyncadd (%p1976_p8), %s229_s16, 4294967264  ;;  %v1870_v0 = vmov 0   ;;  %vm278_vm0 = vcmask 1041408   ;;  %v262_v1 = vld [vmem:[%s232_s17] sm:$0x3]  ;;  %vm274_vm1 = vcmask 31744  }
  0x29   : > { %1767 = vset.pattern.permute.xlu0 %v1870_v0  ;;  %v280_v2 = vsel %vm278_vm0, %v262_v1, 0  ;;  %v263_v3 = vld [vmem:[%s2458_s2] sm:$0xff]  ;;  %v1626_v6 = vld [vmem:[%s2457_s1 + $0x8] sm:$0xf]  ;;  %v1628_v7 = vld [vmem:[%s2457_s1 + $0xc] sm:$0xf] }
  0x2a   : > { %289 = vmatpush.bf16.msra.mxu0 %v280_v2  ;;  %307 = vmatpush.bf16.msra.mxu1 %v280_v2  ;;  %v268_v4 = vld [vmem:[%s2457_s1] sm:$0xf]  ;;  %v1624_v5 = vld [vmem:[%s2457_s1 + $0x4] sm:$0xf]  ;;  %v2031_v8 = vld [vmem:[%s2460_s4 + $0x8] sm:$0xff]  ;;  %vm349_vm2 = vcmask 130048  }
  0x2b   : > { %325 = vmatpush.bf16.msra.mxu2 %v280_v2  ;;  %343 = vmatpush.bf16.msra.mxu3 %v280_v2  ;;  %v2036_v9 = vld [vmem:[%s2459_s3 + $0x8] sm:$0xff]  ;;  %v2043_v10 = vld [vmem:[%s2460_s4] sm:$0xff]  ;;  %s1871_s13 = smov 112   ;;  %s1872_s26 = smov 80   ;;  %vm411_vm3 = vcmask 253952  }
  0x2c   : > { %271 = vperm.xlu0 %1767, %v263_v3   ;;  %v2048_v11 = vld [vmem:[%s2459_s3] sm:$0xff]  ;;  %s1873_s8 = smov 96   ;;  %s1874_s27 = smov 64  }
  0x2d   : > { %1623 = vmatmul.msk.bf16.vlgmr.msra.gmra.mxu0 %vm274_vm1, %v268_v4  ;;  %1625 = vmatmul.msk.bf16.vlgmr.msra.gmra.mxu1 %vm274_vm1, %v1624_v5  ;;  %s1875_s6 = smov 48   ;;  %s1876_s10 = smov 32  }
  0x2e   : > { %1627 = vmatmul.msk.bf16.vlgmr.msra.gmra.mxu2 %vm274_vm1, %v1626_v6  ;;  %1629 = vmatmul.msk.bf16.vlgmr.msra.gmra.mxu3 %vm274_vm1, %v1628_v7  ;;  %s1877_s11 = smov 16   ;;  %s1622_s15 = sshll.u32 %s2005_s30, 7 }
  0x2f   : > { %367 = vmatpush.msrb.mxu0 %v2031_v8  ;;  %390 = vmatpush.msrb.mxu1 %v2036_v9  ;;  %s2099_s16 = scalar_lea.vmem [#allocation5], %s1622_s15  ;;  %s1484_s17 = scalar_lea.sflag [#allocation4], %s2005_s30 }
  0x30   : > { %437 = vmatpush.msrb.mxu2 %v2031_v8  ;;  %460 = vmatpush.msrb.mxu3 %v2036_v9 }
  0x31   : > { %368 = vmatpush.msrb.mxu0 %v2043_v10  ;;  %391 = vmatpush.msrb.mxu1 %v2048_v11 }
  0x32   : > { %438 = vmatpush.msrb.mxu2 %v2043_v10  ;;  %461 = vmatpush.msrb.mxu3 %v2048_v11 }
  0x33   : > { %531 = vmatpush.msra.mxu1 %v2036_v9  ;;  %507 = vmatpush.msra.mxu0 %v2031_v8 }
  0x34   : > { %578 = vmatpush.msra.mxu2 %v2031_v8  ;;  %602 = vmatpush.msra.mxu3 %v2036_v9 }
  0x35   : > { %532 = vmatpush.msra.mxu1 %v2048_v11  ;;  %508 = vmatpush.msra.mxu0 %v2043_v10 }
  0x36   : > { %579 = vmatpush.msra.mxu2 %v2043_v10  ;;  %603 = vmatpush.msra.mxu3 %v2048_v11 }
  0x9e   : > { %v272_v12 = vpop.permute.xlu0 %271 }
  0xaa   : > { %v291_v13 = vpop.f32.mrf.mxu0  ;;  %v309_v14 = vpop.f32.mrf.mxu1 }
  0xab   : > { %v292_v15 = vadd.f32 %v291_v13, %v272_v12  ;;  %v310_v16 = vadd.f32 %v309_v14, %v272_v12 }
  0xad   : > { %489 = vrot.lane.b32.xlu1 %v310_v16, %s1871_s13  ;;  %1630 = vmatmul.msk.f32.vlgmr.msrb.gmra.mxu0 %vm349_vm2, %v310_v16 }
  0xae   : > { %797 = vrot.lane.b32.xlu0 %v292_v15, %s1872_s26  ;;  %513 = vrot.lane.b32.xlu2 %v292_v15, %s1871_s13 }
  0xaf   : > { %1631 = vmatmul.msk.f32.vlgmr.msrb.gmra.mxu1 %vm349_vm2, %v292_v15  ;;  %649 = vmatpush.msrb.mxu0 %v2031_v8 }
  0xb0   : > { %673 = vmatpush.msrb.mxu1 %v2036_v9 }
  0xb1   : > { %v327_v17 = vpop.f32.mrf.mxu2  ;;  %v345_v18 = vpop.f32.mrf.mxu3  ;;  %650 = vmatpush.msrb.mxu0 %v2043_v10 }
  0xb2   : > { %v328_v19 = vadd.f32 %v327_v17, %v272_v12  ;;  %v346_v20 = vadd.f32 %v345_v18, %v272_v12  ;;  %v293_v21 = vpop.f32.mrf.mxu0  ;;  %v311_v22 = vpop.f32.mrf.mxu1  ;;  %674 = vmatpush.msrb.mxu1 %v2048_v11 }
  0xb4   : > { %1632 = vmatmul.msk.f32.vlgmr.msrb.gmra.mxu2 %vm349_vm2, %v346_v20  ;;  %1633 = vmatmul.msk.f32.vlgmr.msrb.gmra.mxu3 %vm349_vm2, %v328_v19 }
  0xb5   : > { %631 = vrot.lane.b32.xlu1 %v310_v16, %s1873_s8  ;;  %720 = vmatpush.msrb.mxu2 %v2031_v8 }
  0xb6   : > { %560 = vrot.lane.b32.xlu0 %v346_v20, %s1871_s13  ;;  %655 = vrot.lane.b32.xlu2 %v292_v15, %s1873_s8 }
  0xb7   : > { %721 = vmatpush.msrb.mxu2 %v2043_v10  ;;  %744 = vmatpush.msrb.mxu3 %v2036_v9 }
  0xb9   : > { %v329_v23 = vpop.f32.mrf.mxu2  ;;  %v347_v24 = vpop.f32.mrf.mxu3  ;;  %745 = vmatpush.msrb.mxu3 %v2048_v11 }
  0xbd   : > { %584 = vrot.lane.b32.xlu1 %v328_v19, %s1871_s13 }
  0xbe   : > { %726 = vrot.lane.b32.xlu0 %v328_v19, %s1873_s8  ;;  %773 = vrot.lane.b32.xlu2 %v310_v16, %s1872_s26 }
  0xc5   : > { %939 = vrot.lane.b32.xlu1 %v292_v15, %s1874_s27 }
  0xc6   : > { %844 = vrot.lane.b32.xlu0 %v346_v20, %s1872_s26  ;;  %702 = vrot.lane.b32.xlu2 %v346_v20, %s1873_s8 }
  0xcd   : > { %868 = vrot.lane.b32.xlu1 %v328_v19, %s1872_s26 }
  0xce   : > { %915 = vrot.lane.b32.xlu0 %v310_v16, %s1874_s27  ;;  %1081 = vrot.lane.b32.xlu2 %v292_v15, %s1875_s6 }
  0xd5   : > { %986 = vrot.lane.b32.xlu1 %v346_v20, %s1874_s27 }
  0xd6   : > { %1152 = vrot.lane.b32.xlu0 %v328_v19, %s1875_s6  ;;  %1010 = vrot.lane.b32.xlu2 %v328_v19, %s1874_s27 }
  0xdd   : > { %1057 = vrot.lane.b32.xlu1 %v310_v16, %s1875_s6 }
  0xde   : > { %1270 = vrot.lane.b32.xlu0 %v346_v20, %s1876_s10  ;;  %1128 = vrot.lane.b32.xlu2 %v346_v20, %s1875_s6 }
  0xe5   : > { %1294 = vrot.lane.b32.xlu1 %v328_v19, %s1876_s10 }
  0xe6   : > { %1223 = vrot.lane.b32.xlu0 %v292_v15, %s1876_s10  ;;  %1199 = vrot.lane.b32.xlu2 %v310_v16, %s1876_s10 }
  0xed   : > { %1412 = vrot.lane.b32.xlu1 %v346_v20, %s1877_s11 }
  0xee   : > { %1341 = vrot.lane.b32.xlu0 %v310_v16, %s1877_s11  ;;  %1436 = vrot.lane.b32.xlu2 %v328_v19, %s1877_s11 }
  0xf5   : > { %1365 = vrot.lane.b32.xlu1 %v292_v15, %s1877_s11 }
 0x108   : > { %v514_v25 = vpop.permute.xlu2 %513 }
 0x109   : > { %1635 = vmatmul.msk.f32.vlgmr.msra.gmra.mxu1 %vm349_vm2, %v514_v25 }
 0x10a   : > { %815 = vmatpush.msra.mxu1 %v2036_v9 }
 0x10c   : > { %816 = vmatpush.msra.mxu1 %v2048_v11 }
 0x110   : > { %v656_v26 = vpop.permute.xlu2 %655 }
 0x111   : > { %1639 = vmatmul.msk.f32.vlgmr.msrb.gmra.mxu1 %vm349_vm2, %v656_v26 }
 0x112   : > { %957 = vmatpush.msrb.mxu1 %v2036_v9 }
 0x114   : > { %958 = vmatpush.msrb.mxu1 %v2048_v11 }
 0x118   : > { %v774_v29 = vpop.permute.xlu2 %773 }
 0x11f   : > { %v490_v27 = vpop.permute.xlu1 %489 }
 0x120   : > { %v798_v28 = vpop.permute.xlu0 %797  ;;  %1634 = vmatmul.msk.f32.vlgmr.msra.gmra.mxu0 %vm349_vm2, %v490_v27  ;;  %v703_v35 = vpop.permute.xlu2 %702 }
 0x121   : > { %1643 = vmatmul.msk.f32.vlgmr.msra.gmra.mxu1 %vm349_vm2, %v798_v28  ;;  %791 = vmatpush.msra.mxu0 %v2031_v8 }
 0x122   : > { %1099 = vmatpush.msra.mxu1 %v2036_v9 }
 0x123   : > { %792 = vmatpush.msra.mxu0 %v2043_v10 }
 0x124   : > { %1100 = vmatpush.msra.mxu1 %v2048_v11 }
 0x127   : > { %v632_v30 = vpop.permute.xlu1 %631 }
 0x128   : > { %v561_v31 = vpop.permute.xlu0 %560  ;;  %1638 = vmatmul.msk.f32.vlgmr.msrb.gmra.mxu0 %vm349_vm2, %v632_v30  ;;  %v1082_v50 = vpop.permute.xlu2 %1081 }
 0x129   : > { %1636 = vmatmul.msk.f32.vlgmr.msra.gmra.mxu2 %vm349_vm2, %v561_v31  ;;  %933 = vmatpush.msrb.mxu0 %v2031_v8 }
 0x12a   : > { %v370_v32 = vpop.f32.mrf.mxu0  ;;  %862 = vmatpush.msra.mxu2 %v2031_v8 }
 0x12b   : > { %934 = vmatpush.msrb.mxu0 %v2043_v10 }
 0x12c   : > { %v393_v33 = vpop.f32.mrf.mxu1  ;;  %863 = vmatpush.msra.mxu2 %v2043_v10 }
 0x12d   : > { %v394_v34 = vadd.f32 %v393_v33, %v370_v32 }
 0x12f   : > { %v397_v36 = vrot.slane %v394_v34, 1  ;;  %v398_v37 = vrot.slane %v394_v34, 2  ;;  %v399_v38 = vrot.slane %v394_v34, 3  ;;  %412 = vst.msk [vmem:[%s2099_s16] sm:$0x1] %vm411_vm3, %v394_v34  ;;  %v585_v39 = vpop.permute.xlu1 %584  ;;  %v400_v40 = vrot.slane %v394_v34, 4 }
 0x130   : > { %v727_v41 = vpop.permute.xlu0 %726  ;;  %1637 = vmatmul.msk.f32.vlgmr.msra.gmra.mxu3 %vm349_vm2, %v585_v39  ;;  %1642 = vmatmul.msk.f32.vlgmr.msra.gmra.mxu0 %vm349_vm2, %v774_v29  ;;  %v401_v42 = vrot.slane %v394_v34, 5  ;;  %v402_v43 = vrot.slane %v394_v34, 6  ;;  %v403_v44 = vrot.slane %v394_v34, 7  ;;  %v1011_v60 = vpop.permute.xlu2 %1010 }
 0x131   : > { %413 = vst.msk [vmem:[%s2099_s16 + $0x10] sm:$0x1] %vm411_vm3, %v397_v36  ;;  %1640 = vmatmul.msk.f32.vlgmr.msrb.gmra.mxu2 %vm349_vm2, %v703_v35  ;;  %886 = vmatpush.msra.mxu3 %v2036_v9 }
 0x132   : > { %414 = vst.msk [vmem:[%s2099_s16 + $0x20] sm:$0x1] %vm411_vm3, %v398_v37  ;;  %1004 = vmatpush.msrb.mxu2 %v2031_v8  ;;  %1075 = vmatpush.msra.mxu0 %v2031_v8 }
 0x133   : > { %415 = vst.msk [vmem:[%s2099_s16 + $0x30] sm:$0x1] %vm411_vm3, %v399_v38  ;;  %887 = vmatpush.msra.mxu3 %v2048_v11 }
 0x134   : > { %416 = vst.msk [vmem:[%s2099_s16 + $0x40] sm:$0x1] %vm411_vm3, %v400_v40  ;;  %1005 = vmatpush.msrb.mxu2 %v2043_v10  ;;  %1076 = vmatpush.msra.mxu0 %v2043_v10 }
 0x135   : > { %417 = vst.msk [vmem:[%s2099_s16 + $0x50] sm:$0x1] %vm411_vm3, %v401_v42 }
 0x136   : > { %418 = vst.msk [vmem:[%s2099_s16 + $0x60] sm:$0x1] %vm411_vm3, %v402_v43 }
 0x137   : > { %419 = vst.msk [vmem:[%s2099_s16 + $0x70] sm:$0x1] %vm411_vm3, %v403_v44  ;;  %v440_v45 = vpop.f32.mrf.mxu2  ;;  %v463_v46 = vpop.f32.mrf.mxu3 }
 0x138   : > { %v464_v47 = vadd.f32 %v463_v46, %v440_v45  ;;  %v940_v48 = vpop.permute.xlu1 %939  ;;  %v845_v49 = vpop.permute.xlu0 %844  ;;  %1641 = vmatmul.msk.f32.vlgmr.msrb.gmra.mxu3 %vm349_vm2, %v727_v41 }
 0x139   : > { %1644 = vmatmul.msk.f32.vlgmr.msra.gmra.mxu2 %vm349_vm2, %v845_v49  ;;  %1647 = vmatmul.msk.f32.vlgmr.msrb.gmra.mxu1 %vm349_vm2, %v940_v48  ;;  %v1129_v63 = vpop.permute.xlu2 %1128 }
 0x13a   : > { %v467_v51 = vrot.slane %v464_v47, 1  ;;  %v468_v52 = vrot.slane %v464_v47, 2  ;;  %v469_v53 = vrot.slane %v464_v47, 3  ;;  %481 = vst.msk [vmem:[%s2099_s16 + $0x1] sm:$0x1] %vm411_vm3, %v464_v47  ;;  %1028 = vmatpush.msrb.mxu3 %v2036_v9  ;;  %1146 = vmatpush.msra.mxu2 %v2031_v8  ;;  %v470_v54 = vrot.slane %v464_v47, 4 }
 0x13b   : > { %1241 = vmatpush.msrb.mxu1 %v2036_v9  ;;  %v471_v55 = vrot.slane %v464_v47, 5  ;;  %v472_v56 = vrot.slane %v464_v47, 6  ;;  %v473_v57 = vrot.slane %v464_v47, 7 }
 0x13c   : > { %482 = vst.msk [vmem:[%s2099_s16 + $0x11] sm:$0x1] %vm411_vm3, %v467_v51  ;;  %1029 = vmatpush.msrb.mxu3 %v2048_v11  ;;  %1147 = vmatpush.msra.mxu2 %v2043_v10 }
 0x13d   : > { %483 = vst.msk [vmem:[%s2099_s16 + $0x21] sm:$0x1] %vm411_vm3, %v468_v52  ;;  %1242 = vmatpush.msrb.mxu1 %v2048_v11 }
 0x13e   : > { %484 = vst.msk [vmem:[%s2099_s16 + $0x31] sm:$0x1] %vm411_vm3, %v469_v53 }
 0x13f   : > { %485 = vst.msk [vmem:[%s2099_s16 + $0x41] sm:$0x1] %vm411_vm3, %v470_v54 }
 0x140   : > { %486 = vst.msk [vmem:[%s2099_s16 + $0x51] sm:$0x1] %vm411_vm3, %v471_v55  ;;  %v869_v58 = vpop.permute.xlu1 %868  ;;  %v916_v59 = vpop.permute.xlu0 %915 }
 0x141   : > { %487 = vst.msk [vmem:[%s2099_s16 + $0x61] sm:$0x1] %vm411_vm3, %v472_v56  ;;  %1645 = vmatmul.msk.f32.vlgmr.msra.gmra.mxu3 %vm349_vm2, %v869_v58  ;;  %1646 = vmatmul.msk.f32.vlgmr.msrb.gmra.mxu0 %vm349_vm2, %v916_v59  ;;  %v1200_v2 = vpop.permute.xlu2 %1199 }
 0x142   : > { %488 = vst.msk [vmem:[%s2099_s16 + $0x71] sm:$0x1] %vm411_vm3, %v473_v57  ;;  %1651 = vmatmul.msk.f32.vlgmr.msra.gmra.mxu1 %vm349_vm2, %v1082_v50  ;;  %1170 = vmatpush.msra.mxu3 %v2036_v9 }
 0x143   : > { %1217 = vmatpush.msrb.mxu0 %v2031_v8  ;;  %1383 = vmatpush.msra.mxu1 %v2036_v9 }
 0x144   : > { %1171 = vmatpush.msra.mxu3 %v2048_v11 }
 0x145   : > { %1218 = vmatpush.msrb.mxu0 %v2043_v10  ;;  %1384 = vmatpush.msra.mxu1 %v2048_v11 }
 0x148   : > { %v987_v61 = vpop.permute.xlu1 %986  ;;  %v1153_v62 = vpop.permute.xlu0 %1152 }
 0x149   : > { %1648 = vmatmul.msk.f32.vlgmr.msrb.gmra.mxu2 %vm349_vm2, %v987_v61  ;;  %1649 = vmatmul.msk.f32.vlgmr.msrb.gmra.mxu3 %vm349_vm2, %v1011_v60  ;;  %v1437_v7 = vpop.permute.xlu2 %1436 }
 0x14a   : > { %1288 = vmatpush.msrb.mxu2 %v2031_v8  ;;  %1312 = vmatpush.msrb.mxu3 %v2036_v9 }
 0x14c   : > { %1289 = vmatpush.msrb.mxu2 %v2043_v10  ;;  %1313 = vmatpush.msrb.mxu3 %v2048_v11 }
 0x150   : > { %v1058_v0 = vpop.permute.xlu1 %1057  ;;  %v1271_v1 = vpop.permute.xlu0 %1270 }
 0x151   : > { %1650 = vmatmul.msk.f32.vlgmr.msra.gmra.mxu0 %vm349_vm2, %v1058_v0  ;;  %1652 = vmatmul.msk.f32.vlgmr.msra.gmra.mxu2 %vm349_vm2, %v1129_v63 }
 0x152   : > { %1653 = vmatmul.msk.f32.vlgmr.msra.gmra.mxu3 %vm349_vm2, %v1153_v62  ;;  %1430 = vmatpush.msra.mxu2 %v2031_v8 }
 0x153   : > { %1454 = vmatpush.msra.mxu3 %v2036_v9  ;;  %1359 = vmatpush.msra.mxu0 %v2031_v8 }
 0x154   : > { %1431 = vmatpush.msra.mxu2 %v2043_v10 }
 0x155   : > { %1455 = vmatpush.msra.mxu3 %v2048_v11  ;;  %1360 = vmatpush.msra.mxu0 %v2043_v10 }
 0x158   : > { %v1295_v3 = vpop.permute.xlu1 %1294  ;;  %v1224_v4 = vpop.permute.xlu0 %1223 }
 0x159   : > { %1654 = vmatmul.msk.f32.vlgmr.msrb.gmra.mxu0 %vm349_vm2, %v1200_v2  ;;  %1655 = vmatmul.msk.f32.vlgmr.msrb.gmra.mxu1 %vm349_vm2, %v1224_v4 }
 0x15a   : > { %1656 = vmatmul.msk.f32.vlgmr.msrb.gmra.mxu2 %vm349_vm2, %v1271_v1  ;;  %1657 = vmatmul.msk.f32.vlgmr.msrb.gmra.mxu3 %vm349_vm2, %v1295_v3 }
 0x160   : > { %v1413_v5 = vpop.permute.xlu1 %1412  ;;  %v1342_v6 = vpop.permute.xlu0 %1341 }
 0x161   : > { %1658 = vmatmul.msk.f32.vlgmr.msra.gmra.mxu0 %vm349_vm2, %v1342_v6 }
 0x162   : > { %1660 = vmatmul.msk.f32.vlgmr.msra.gmra.mxu2 %vm349_vm2, %v1413_v5  ;;  %1661 = vmatmul.msk.f32.vlgmr.msra.gmra.mxu3 %vm349_vm2, %v1437_v7 }
 0x168   : > { %v1366_v8 = vpop.permute.xlu1 %1365 }
 0x169   : > { %1659 = vmatmul.msk.f32.vlgmr.msra.gmra.mxu1 %vm349_vm2, %v1366_v8 }
 0x186   : > { %v534_v9 = vpop.f32.mrf.mxu1 }
 0x18e   : > { %v676_v19 = vpop.f32.mrf.mxu1 }
 0x19d   : > { %v510_v10 = vpop.f32.mrf.mxu0 }
 0x19e   : > { %v535_v11 = vadd.f32 %v534_v9, %v510_v10  ;;  %v818_v29 = vpop.f32.mrf.mxu1 }
 0x1a0   : > { %v538_v12 = vrot.slane %v535_v11, 1  ;;  %v539_v13 = vrot.slane %v535_v11, 2  ;;  %v540_v14 = vrot.slane %v535_v11, 3  ;;  %552 = vst.msk [vmem:[%s2099_s16 + $0x2] sm:$0x1] %vm411_vm3, %v535_v11  ;;  %v541_v15 = vrot.slane %v535_v11, 4 }
 0x1a1   : > { %v542_v16 = vrot.slane %v535_v11, 5  ;;  %v543_v17 = vrot.slane %v535_v11, 6  ;;  %v544_v18 = vrot.slane %v535_v11, 7 }
 0x1a2   : > { %553 = vst.msk [vmem:[%s2099_s16 + $0x12] sm:$0x1] %vm411_vm3, %v538_v12 }
 0x1a3   : > { %554 = vst.msk [vmem:[%s2099_s16 + $0x22] sm:$0x1] %vm411_vm3, %v539_v13 }
 0x1a4   : > { %555 = vst.msk [vmem:[%s2099_s16 + $0x32] sm:$0x1] %vm411_vm3, %v540_v14 }
 0x1a5   : > { %556 = vst.msk [vmem:[%s2099_s16 + $0x42] sm:$0x1] %vm411_vm3, %v541_v15  ;;  %v652_v20 = vpop.f32.mrf.mxu0 }
 0x1a6   : > { %557 = vst.msk [vmem:[%s2099_s16 + $0x52] sm:$0x1] %vm411_vm3, %v542_v16  ;;  %v677_v21 = vadd.f32 %v676_v19, %v652_v20 }
 0x1a7   : > { %558 = vst.msk [vmem:[%s2099_s16 + $0x62] sm:$0x1] %vm411_vm3, %v543_v17 }
 0x1a8   : > { %559 = vst.msk [vmem:[%s2099_s16 + $0x72] sm:$0x1] %vm411_vm3, %v544_v18  ;;  %v680_v22 = vrot.slane %v677_v21, 1  ;;  %v681_v23 = vrot.slane %v677_v21, 2  ;;  %v682_v24 = vrot.slane %v677_v21, 3  ;;  %v683_v25 = vrot.slane %v677_v21, 4 }
 0x1a9   : > { %694 = vst.msk [vmem:[%s2099_s16 + $0x4] sm:$0x1] %vm411_vm3, %v677_v21  ;;  %v684_v26 = vrot.slane %v677_v21, 5  ;;  %v685_v27 = vrot.slane %v677_v21, 6  ;;  %v686_v28 = vrot.slane %v677_v21, 7 }
 0x1aa   : > { %695 = vst.msk [vmem:[%s2099_s16 + $0x14] sm:$0x1] %vm411_vm3, %v680_v22 }
 0x1ab   : > { %696 = vst.msk [vmem:[%s2099_s16 + $0x24] sm:$0x1] %vm411_vm3, %v681_v23 }
 0x1ac   : > { %697 = vst.msk [vmem:[%s2099_s16 + $0x34] sm:$0x1] %vm411_vm3, %v682_v24  ;;  %v581_v35 = vpop.f32.mrf.mxu2 }
 0x1ad   : > { %698 = vst.msk [vmem:[%s2099_s16 + $0x44] sm:$0x1] %vm411_vm3, %v683_v25  ;;  %v794_v30 = vpop.f32.mrf.mxu0 }
 0x1ae   : > { %699 = vst.msk [vmem:[%s2099_s16 + $0x54] sm:$0x1] %vm411_vm3, %v684_v26  ;;  %v819_v31 = vadd.f32 %v818_v29, %v794_v30 }
 0x1af   : > { %700 = vst.msk [vmem:[%s2099_s16 + $0x64] sm:$0x1] %vm411_vm3, %v685_v27 }
 0x1b0   : > { %701 = vst.msk [vmem:[%s2099_s16 + $0x74] sm:$0x1] %vm411_vm3, %v686_v28  ;;  %v822_v32 = vrot.slane %v819_v31, 1  ;;  %v823_v33 = vrot.slane %v819_v31, 2  ;;  %v824_v34 = vrot.slane %v819_v31, 3  ;;  %v825_v36 = vrot.slane %v819_v31, 4 }
 0x1b1   : > { %836 = vst.msk [vmem:[%s2099_s16 + $0x6] sm:$0x1] %vm411_vm3, %v819_v31  ;;  %v826_v37 = vrot.slane %v819_v31, 5  ;;  %v827_v38 = vrot.slane %v819_v31, 6  ;;  %v828_v40 = vrot.slane %v819_v31, 7 }
 0x1b2   : > { %837 = vst.msk [vmem:[%s2099_s16 + $0x16] sm:$0x1] %vm411_vm3, %v822_v32 }
 0x1b3   : > { %838 = vst.msk [vmem:[%s2099_s16 + $0x26] sm:$0x1] %vm411_vm3, %v823_v33  ;;  %v605_v39 = vpop.f32.mrf.mxu3 }
 0x1b4   : > { %839 = vst.msk [vmem:[%s2099_s16 + $0x36] sm:$0x1] %vm411_vm3, %v824_v34  ;;  %v606_v41 = vadd.f32 %v605_v39, %v581_v35  ;;  %v723_v48 = vpop.f32.mrf.mxu2 }
 0x1b5   : > { %840 = vst.msk [vmem:[%s2099_s16 + $0x46] sm:$0x1] %vm411_vm3, %v825_v36 }
 0x1b6   : > { %841 = vst.msk [vmem:[%s2099_s16 + $0x56] sm:$0x1] %vm411_vm3, %v826_v37  ;;  %v609_v42 = vrot.slane %v606_v41, 1  ;;  %v610_v43 = vrot.slane %v606_v41, 2  ;;  %v611_v44 = vrot.slane %v606_v41, 3  ;;  %v612_v45 = vrot.slane %v606_v41, 4  ;;  %v960_v56 = vpop.f32.mrf.mxu1 }
 0x1b7   : > { %842 = vst.msk [vmem:[%s2099_s16 + $0x66] sm:$0x1] %vm411_vm3, %v827_v38  ;;  %v613_v46 = vrot.slane %v606_v41, 5  ;;  %v614_v47 = vrot.slane %v606_v41, 6  ;;  %v615_v50 = vrot.slane %v606_v41, 7 }
 0x1b8   : > { %843 = vst.msk [vmem:[%s2099_s16 + $0x76] sm:$0x1] %vm411_vm3, %v828_v40 }
 0x1b9   : > { %623 = vst.msk [vmem:[%s2099_s16 + $0x3] sm:$0x1] %vm411_vm3, %v606_v41 }
 0x1ba   : > { %624 = vst.msk [vmem:[%s2099_s16 + $0x13] sm:$0x1] %vm411_vm3, %v609_v42 }
 0x1bb   : > { %625 = vst.msk [vmem:[%s2099_s16 + $0x23] sm:$0x1] %vm411_vm3, %v610_v43  ;;  %v747_v49 = vpop.f32.mrf.mxu3 }
 0x1bc   : > { %626 = vst.msk [vmem:[%s2099_s16 + $0x33] sm:$0x1] %vm411_vm3, %v611_v44  ;;  %v748_v51 = vadd.f32 %v747_v49, %v723_v48  ;;  %v865_v0 = vpop.f32.mrf.mxu2 }
 0x1bd   : > { %627 = vst.msk [vmem:[%s2099_s16 + $0x43] sm:$0x1] %vm411_vm3, %v612_v45 }
 0x1be   : > { %628 = vst.msk [vmem:[%s2099_s16 + $0x53] sm:$0x1] %vm411_vm3, %v613_v46  ;;  %v751_v52 = vrot.slane %v748_v51, 1  ;;  %v752_v53 = vrot.slane %v748_v51, 2  ;;  %v936_v54 = vpop.f32.mrf.mxu0  ;;  %v753_v55 = vrot.slane %v748_v51, 3  ;;  %v754_v57 = vrot.slane %v748_v51, 4 }
 0x1bf   : > { %629 = vst.msk [vmem:[%s2099_s16 + $0x63] sm:$0x1] %vm411_vm3, %v614_v47  ;;  %v755_v58 = vrot.slane %v748_v51, 5  ;;  %v961_v59 = vadd.f32 %v960_v56, %v936_v54  ;;  %v756_v60 = vrot.slane %v748_v51, 6  ;;  %v757_v61 = vrot.slane %v748_v51, 7  ;;  %v1102_v22 = vpop.f32.mrf.mxu1 }
 0x1c0   : > { %630 = vst.msk [vmem:[%s2099_s16 + $0x73] sm:$0x1] %vm411_vm3, %v615_v50 }
 0x1c1   : > { %765 = vst.msk [vmem:[%s2099_s16 + $0x5] sm:$0x1] %vm411_vm3, %v748_v51  ;;  %v964_v63 = vrot.slane %v961_v59, 1  ;;  %v965_v1 = vrot.slane %v961_v59, 2  ;;  %v966_v2 = vrot.slane %v961_v59, 3  ;;  %v967_v3 = vrot.slane %v961_v59, 4 }
 0x1c2   : > { %766 = vst.msk [vmem:[%s2099_s16 + $0x15] sm:$0x1] %vm411_vm3, %v751_v52  ;;  %v968_v4 = vrot.slane %v961_v59, 5  ;;  %v969_v6 = vrot.slane %v961_v59, 6  ;;  %v970_v7 = vrot.slane %v961_v59, 7 }
 0x1c3   : > { %767 = vst.msk [vmem:[%s2099_s16 + $0x25] sm:$0x1] %vm411_vm3, %v752_v53 }
 0x1c4   : > { %768 = vst.msk [vmem:[%s2099_s16 + $0x35] sm:$0x1] %vm411_vm3, %v753_v55  ;;  %v889_v62 = vpop.f32.mrf.mxu3 }
 0x1c5   : > { %769 = vst.msk [vmem:[%s2099_s16 + $0x45] sm:$0x1] %vm411_vm3, %v754_v57  ;;  %v890_v5 = vadd.f32 %v889_v62, %v865_v0 }
 0x1c6   : > { %770 = vst.msk [vmem:[%s2099_s16 + $0x55] sm:$0x1] %vm411_vm3, %v755_v58 }
 0x1c7   : > { %771 = vst.msk [vmem:[%s2099_s16 + $0x65] sm:$0x1] %vm411_vm3, %v756_v60  ;;  %v893_v8 = vrot.slane %v890_v5, 1  ;;  %v894_v9 = vrot.slane %v890_v5, 2  ;;  %v895_v12 = vrot.slane %v890_v5, 3  ;;  %v896_v13 = vrot.slane %v890_v5, 4 }
 0x1c8   : > { %772 = vst.msk [vmem:[%s2099_s16 + $0x75] sm:$0x1] %vm411_vm3, %v757_v61  ;;  %v897_v14 = vrot.slane %v890_v5, 5  ;;  %v898_v16 = vrot.slane %v890_v5, 6  ;;  %v899_v17 = vrot.slane %v890_v5, 7 }
 0x1c9   : > { %978 = vst.msk [vmem:[%s2099_s16 + $0x8] sm:$0x1] %vm411_vm3, %v961_v59 }
 0x1ca   : > { %979 = vst.msk [vmem:[%s2099_s16 + $0x18] sm:$0x1] %vm411_vm3, %v964_v63 }
 0x1cb   : > { %980 = vst.msk [vmem:[%s2099_s16 + $0x28] sm:$0x1] %vm411_vm3, %v965_v1 }
 0x1cc   : > { %981 = vst.msk [vmem:[%s2099_s16 + $0x38] sm:$0x1] %vm411_vm3, %v966_v2  ;;  %v1007_v10 = vpop.f32.mrf.mxu2  ;;  %v1031_v11 = vpop.f32.mrf.mxu3 }
 0x1cd   : > { %982 = vst.msk [vmem:[%s2099_s16 + $0x48] sm:$0x1] %vm411_vm3, %v967_v3  ;;  %v1032_v15 = vadd.f32 %v1031_v11, %v1007_v10 }
 0x1ce   : > { %983 = vst.msk [vmem:[%s2099_s16 + $0x58] sm:$0x1] %vm411_vm3, %v968_v4  ;;  %v1078_v20 = vpop.f32.mrf.mxu0 }
 0x1cf   : > { %984 = vst.msk [vmem:[%s2099_s16 + $0x68] sm:$0x1] %vm411_vm3, %v969_v6  ;;  %v1035_v18 = vrot.slane %v1032_v15, 1  ;;  %v1036_v19 = vrot.slane %v1032_v15, 2  ;;  %v1037_v21 = vrot.slane %v1032_v15, 3  ;;  %v1038_v23 = vrot.slane %v1032_v15, 4 }
 0x1d0   : > { %985 = vst.msk [vmem:[%s2099_s16 + $0x78] sm:$0x1] %vm411_vm3, %v970_v7  ;;  %v1039_v24 = vrot.slane %v1032_v15, 5  ;;  %v1103_v25 = vadd.f32 %v1102_v22, %v1078_v20  ;;  %v1040_v26 = vrot.slane %v1032_v15, 6  ;;  %v1041_v27 = vrot.slane %v1032_v15, 7 }
 0x1d1   : > { %907 = vst.msk [vmem:[%s2099_s16 + $0x7] sm:$0x1] %vm411_vm3, %v890_v5 }
 0x1d2   : > { %908 = vst.msk [vmem:[%s2099_s16 + $0x17] sm:$0x1] %vm411_vm3, %v893_v8  ;;  %v1106_v28 = vrot.slane %v1103_v25, 1  ;;  %v1107_v29 = vrot.slane %v1103_v25, 2  ;;  %v1108_v32 = vrot.slane %v1103_v25, 3  ;;  %v1109_v33 = vrot.slane %v1103_v25, 4 }
 0x1d3   : > { %909 = vst.msk [vmem:[%s2099_s16 + $0x27] sm:$0x1] %vm411_vm3, %v894_v9  ;;  %v1110_v34 = vrot.slane %v1103_v25, 5  ;;  %v1111_v36 = vrot.slane %v1103_v25, 6  ;;  %v1112_v37 = vrot.slane %v1103_v25, 7 }
 0x1d4   : > { %910 = vst.msk [vmem:[%s2099_s16 + $0x37] sm:$0x1] %vm411_vm3, %v895_v12  ;;  %v1149_v30 = vpop.f32.mrf.mxu2 }
 0x1d5   : > { %911 = vst.msk [vmem:[%s2099_s16 + $0x47] sm:$0x1] %vm411_vm3, %v896_v13  ;;  %v1173_v31 = vpop.f32.mrf.mxu3 }
 0x1d6   : > { %912 = vst.msk [vmem:[%s2099_s16 + $0x57] sm:$0x1] %vm411_vm3, %v897_v14  ;;  %v1174_v35 = vadd.f32 %v1173_v31, %v1149_v30  ;;  %v1220_v40 = vpop.f32.mrf.mxu0  ;;  %v1244_v41 = vpop.f32.mrf.mxu1 }
 0x1d7   : > { %913 = vst.msk [vmem:[%s2099_s16 + $0x67] sm:$0x1] %vm411_vm3, %v898_v16  ;;  %v1245_v45 = vadd.f32 %v1244_v41, %v1220_v40 }
 0x1d8   : > { %914 = vst.msk [vmem:[%s2099_s16 + $0x77] sm:$0x1] %vm411_vm3, %v899_v17  ;;  %v1177_v38 = vrot.slane %v1174_v35, 1  ;;  %v1178_v39 = vrot.slane %v1174_v35, 2  ;;  %v1179_v42 = vrot.slane %v1174_v35, 3  ;;  %v1180_v43 = vrot.slane %v1174_v35, 4 }
 0x1d9   : > { %1049 = vst.msk [vmem:[%s2099_s16 + $0x9] sm:$0x1] %vm411_vm3, %v1032_v15  ;;  %v1181_v44 = vrot.slane %v1174_v35, 5  ;;  %v1182_v46 = vrot.slane %v1174_v35, 6  ;;  %v1183_v47 = vrot.slane %v1174_v35, 7  ;;  %v1248_v50 = vrot.slane %v1245_v45, 1 }
 0x1da   : > { %1050 = vst.msk [vmem:[%s2099_s16 + $0x19] sm:$0x1] %vm411_vm3, %v1035_v18  ;;  %v1249_v51 = vrot.slane %v1245_v45, 2  ;;  %v1250_v52 = vrot.slane %v1245_v45, 3  ;;  %v1251_v53 = vrot.slane %v1245_v45, 4  ;;  %v1252_v54 = vrot.slane %v1245_v45, 5 }
 0x1db   : > { %1051 = vst.msk [vmem:[%s2099_s16 + $0x29] sm:$0x1] %vm411_vm3, %v1036_v19  ;;  %v1253_v56 = vrot.slane %v1245_v45, 6  ;;  %v1254_v57 = vrot.slane %v1245_v45, 7 }
 0x1dc   : > { %1052 = vst.msk [vmem:[%s2099_s16 + $0x39] sm:$0x1] %vm411_vm3, %v1037_v21 }
 0x1dd   : > { %1053 = vst.msk [vmem:[%s2099_s16 + $0x49] sm:$0x1] %vm411_vm3, %v1038_v23  ;;  %v1291_v48 = vpop.f32.mrf.mxu2  ;;  %v1315_v49 = vpop.f32.mrf.mxu3 }
 0x1de   : > { %1054 = vst.msk [vmem:[%s2099_s16 + $0x59] sm:$0x1] %vm411_vm3, %v1039_v24  ;;  %v1316_v55 = vadd.f32 %v1315_v49, %v1291_v48  ;;  %v1362_v8 = vpop.f32.mrf.mxu0 }
 0x1df   : > { %1055 = vst.msk [vmem:[%s2099_s16 + $0x69] sm:$0x1] %vm411_vm3, %v1040_v26 }
 0x1e0   : > { %1056 = vst.msk [vmem:[%s2099_s16 + $0x79] sm:$0x1] %vm411_vm3, %v1041_v27  ;;  %v1319_v58 = vrot.slane %v1316_v55, 1  ;;  %v1320_v59 = vrot.slane %v1316_v55, 2  ;;  %v1321_v62 = vrot.slane %v1316_v55, 3  ;;  %v1322_v63 = vrot.slane %v1316_v55, 4 }
 0x1e1   : > { %1120 = vst.msk [vmem:[%s2099_s16 + $0xa] sm:$0x1] %vm411_vm3, %v1103_v25  ;;  %v1323_v0 = vrot.slane %v1316_v55, 5  ;;  %v1324_v2 = vrot.slane %v1316_v55, 6  ;;  %v1325_v3 = vrot.slane %v1316_v55, 7 }
 0x1e2   : > { %1121 = vst.msk [vmem:[%s2099_s16 + $0x1a] sm:$0x1] %vm411_vm3, %v1106_v28 }
 0x1e3   : > { %1122 = vst.msk [vmem:[%s2099_s16 + $0x2a] sm:$0x1] %vm411_vm3, %v1107_v29 }
 0x1e4   : > { %1123 = vst.msk [vmem:[%s2099_s16 + $0x3a] sm:$0x1] %vm411_vm3, %v1108_v32 }
 0x1e5   : > { %1124 = vst.msk [vmem:[%s2099_s16 + $0x4a] sm:$0x1] %vm411_vm3, %v1109_v33  ;;  %v1433_v60 = vpop.f32.mrf.mxu2  ;;  %v1457_v61 = vpop.f32.mrf.mxu3 }
 0x1e6   : > { %1125 = vst.msk [vmem:[%s2099_s16 + $0x5a] sm:$0x1] %vm411_vm3, %v1110_v34  ;;  %v1458_v1 = vadd.f32 %v1457_v61, %v1433_v60  ;;  %v1386_v6 = vpop.f32.mrf.mxu1 }
 0x1e7   : > { %1126 = vst.msk [vmem:[%s2099_s16 + $0x6a] sm:$0x1] %vm411_vm3, %v1111_v36  ;;  %v1387_v11 = vadd.f32 %v1386_v6, %v1362_v8 }
 0x1e8   : > { %1127 = vst.msk [vmem:[%s2099_s16 + $0x7a] sm:$0x1] %vm411_vm3, %v1112_v37  ;;  %v1461_v4 = vrot.slane %v1458_v1, 1  ;;  %v1462_v5 = vrot.slane %v1458_v1, 2  ;;  %v1463_v7 = vrot.slane %v1458_v1, 3  ;;  %v1464_v9 = vrot.slane %v1458_v1, 4 }
 0x1e9   : > { %1191 = vst.msk [vmem:[%s2099_s16 + $0xb] sm:$0x1] %vm411_vm3, %v1174_v35  ;;  %v1465_v10 = vrot.slane %v1458_v1, 5  ;;  %v1466_v12 = vrot.slane %v1458_v1, 6  ;;  %v1467_v13 = vrot.slane %v1458_v1, 7  ;;  %v1390_v14 = vrot.slane %v1387_v11, 1 }
 0x1ea   : > { %1192 = vst.msk [vmem:[%s2099_s16 + $0x1b] sm:$0x1] %vm411_vm3, %v1177_v38  ;;  %v1391_v15 = vrot.slane %v1387_v11, 2  ;;  %v1392_v16 = vrot.slane %v1387_v11, 3  ;;  %v1393_v17 = vrot.slane %v1387_v11, 4  ;;  %v1394_v18 = vrot.slane %v1387_v11, 5 }
 0x1eb   : > { %1193 = vst.msk [vmem:[%s2099_s16 + $0x2b] sm:$0x1] %vm411_vm3, %v1178_v39  ;;  %v1395_v19 = vrot.slane %v1387_v11, 6  ;;  %v1396_v20 = vrot.slane %v1387_v11, 7 }
 0x1ec   : > { %1194 = vst.msk [vmem:[%s2099_s16 + $0x3b] sm:$0x1] %vm411_vm3, %v1179_v42 }
 0x1ed   : > { %1195 = vst.msk [vmem:[%s2099_s16 + $0x4b] sm:$0x1] %vm411_vm3, %v1180_v43 }
 0x1ee   : > { %1196 = vst.msk [vmem:[%s2099_s16 + $0x5b] sm:$0x1] %vm411_vm3, %v1181_v44 }
 0x1ef   : > { %1197 = vst.msk [vmem:[%s2099_s16 + $0x6b] sm:$0x1] %vm411_vm3, %v1182_v46 }
 0x1f0   : > { %1198 = vst.msk [vmem:[%s2099_s16 + $0x7b] sm:$0x1] %vm411_vm3, %v1183_v47 }
 0x1f1   : > { %1262 = vst.msk [vmem:[%s2099_s16 + $0xc] sm:$0x1] %vm411_vm3, %v1245_v45 }
 0x1f2   : > { %1263 = vst.msk [vmem:[%s2099_s16 + $0x1c] sm:$0x1] %vm411_vm3, %v1248_v50 }
 0x1f3   : > { %1264 = vst.msk [vmem:[%s2099_s16 + $0x2c] sm:$0x1] %vm411_vm3, %v1249_v51 }
 0x1f4   : > { %1265 = vst.msk [vmem:[%s2099_s16 + $0x3c] sm:$0x1] %vm411_vm3, %v1250_v52 }
 0x1f5   : > { %1266 = vst.msk [vmem:[%s2099_s16 + $0x4c] sm:$0x1] %vm411_vm3, %v1251_v53 }
 0x1f6   : > { %1267 = vst.msk [vmem:[%s2099_s16 + $0x5c] sm:$0x1] %vm411_vm3, %v1252_v54 }
 0x1f7   : > { %1268 = vst.msk [vmem:[%s2099_s16 + $0x6c] sm:$0x1] %vm411_vm3, %v1253_v56 }
 0x1f8   : > { %1269 = vst.msk [vmem:[%s2099_s16 + $0x7c] sm:$0x1] %vm411_vm3, %v1254_v57 }
 0x1f9   : > { %1333 = vst.msk [vmem:[%s2099_s16 + $0xd] sm:$0x1] %vm411_vm3, %v1316_v55 }
 0x1fa   : > { %1334 = vst.msk [vmem:[%s2099_s16 + $0x1d] sm:$0x1] %vm411_vm3, %v1319_v58 }
 0x1fb   : > { %1335 = vst.msk [vmem:[%s2099_s16 + $0x2d] sm:$0x1] %vm411_vm3, %v1320_v59 }
 0x1fc   : > { %1336 = vst.msk [vmem:[%s2099_s16 + $0x3d] sm:$0x1] %vm411_vm3, %v1321_v62 }
 0x1fd   : > { %1337 = vst.msk [vmem:[%s2099_s16 + $0x4d] sm:$0x1] %vm411_vm3, %v1322_v63 }
 0x1fe   : > { %1338 = vst.msk [vmem:[%s2099_s16 + $0x5d] sm:$0x1] %vm411_vm3, %v1323_v0 }
 0x1ff   : > { %1339 = vst.msk [vmem:[%s2099_s16 + $0x6d] sm:$0x1] %vm411_vm3, %v1324_v2 }
 0x200   : > { %1340 = vst.msk [vmem:[%s2099_s16 + $0x7d] sm:$0x1] %vm411_vm3, %v1325_v3 }
 0x201   : > { %1475 = vst.msk [vmem:[%s2099_s16 + $0xf] sm:$0x1] %vm411_vm3, %v1458_v1 }
 0x202   : > { %1476 = vst.msk [vmem:[%s2099_s16 + $0x1f] sm:$0x1] %vm411_vm3, %v1461_v4 }
 0x203   : > { %1477 = vst.msk [vmem:[%s2099_s16 + $0x2f] sm:$0x1] %vm411_vm3, %v1462_v5 }
 0x204   : > { %1478 = vst.msk [vmem:[%s2099_s16 + $0x3f] sm:$0x1] %vm411_vm3, %v1463_v7 }
 0x205   : > { %1479 = vst.msk [vmem:[%s2099_s16 + $0x4f] sm:$0x1] %vm411_vm3, %v1464_v9 }
 0x206   : > { %1480 = vst.msk [vmem:[%s2099_s16 + $0x5f] sm:$0x1] %vm411_vm3, %v1465_v10 }
 0x207   : > { %1481 = vst.msk [vmem:[%s2099_s16 + $0x6f] sm:$0x1] %vm411_vm3, %v1466_v12 }
 0x208   : > { %1482 = vst.msk [vmem:[%s2099_s16 + $0x7f] sm:$0x1] %vm411_vm3, %v1467_v13 }
 0x209   : > { %1404 = vst.msk [vmem:[%s2099_s16 + $0xe] sm:$0x1] %vm411_vm3, %v1387_v11 }
 0x20a   : > { %1405 = vst.msk [vmem:[%s2099_s16 + $0x1e] sm:$0x1] %vm411_vm3, %v1390_v14 }
 0x20b   : > { %1406 = vst.msk [vmem:[%s2099_s16 + $0x2e] sm:$0x1] %vm411_vm3, %v1391_v15 }
 0x20c   : > { %1407 = vst.msk [vmem:[%s2099_s16 + $0x3e] sm:$0x1] %vm411_vm3, %v1392_v16 }
 0x20d   : > { %1408 = vst.msk [vmem:[%s2099_s16 + $0x4e] sm:$0x1] %vm411_vm3, %v1393_v17 }
 0x20e   : > { %1409 = vst.msk [vmem:[%s2099_s16 + $0x5e] sm:$0x1] %vm411_vm3, %v1394_v18 }
 0x20f   : > { %1410 = vst.msk [vmem:[%s2099_s16 + $0x6e] sm:$0x1] %vm411_vm3, %v1395_v19 }
 0x210   : > { %1411 = vst.msk [vmem:[%s2099_s16 + $0x7e] sm:$0x1] %vm411_vm3, %v1396_v20 }
 0x211   : > { %s1663_s28 = sshll.u32 %s1852_s21, 1  ;;  %s1664_s29 = sshll.u32 %s1856_s22, 5 }
 0x212   : > { %s1495_s7 = sadd.s32 %s1664_s29, %s1663_s28  ;;  %s1508_s12 = sshll.u32 %s2099_s16, 4  ;;  %s1509_s12 = int_to_ptr.vmem [resolvable:$true] %s1508_s12 }
 0x213   : > { %s1665_s13 = sshll.u32 %s1495_s7, 3  ;;  %s1878_s6 = smov 256  }
 0x214   : > { %s1497_s27 = scalar_lea.hbm %s2461_s5, %s1665_s13  ;;  %1670 = sst [smem:[#allocation7]] (%p1980_p9), %s1878_s6 }
 0x215   : > { %s1510_s30 = sshll.u32 %s1497_s27, 4  ;;  %s1879_s10 = smov 512   ;;  %s1511_s30 = int_to_ptr.hbm [resolvable:$true] %s1510_s30 }
 0x216   : > { %1671 = sst [smem:[#allocation7 + $0x1]] (%p1980_p9), %s1879_s10  ;;  %s1880_s21 = smov 2  }
 0x217   : > { %1672 = sst [smem:[#allocation7 + $0x2]] (%p1980_p9), %s1880_s21  ;;  %s1881_s22 = smov 128  }
 0x218   : > { %1673 = sst [smem:[#allocation7 + $0x3]] (%p1980_p9), %s1881_s22  ;;  %s1882_s11 = smov 8  }
 0x219   : > { %1674 = sst [smem:[#allocation7 + $0x4]] (%p1980_p9), %s1881_s22  ;;  %s1883_s15 = smov [#allocation6]  }
 0x21a   : > { %1675 = sst [smem:[#allocation7 + $0x5]] (%p1980_p9), %s1882_s11  ;;  %s1884_s16 = smov 0  }
 0x21b   : > { %1676 = dma.general (%p1980_p9), %s1509_s12, 2048, %s1511_s30, %s1484_s17, %s1883_s15, [#allocation7], %s1884_s16, 0  }
 0x21c PF: > { %p1687_p3 = scmp.ge.s32.totalorder %s1868_s25, 2  ;;  %s1538_s29 = sand.u32 1, %s1840_s18  }
 0x21d   : > { %s1539_s7 = scalar_lea.sflag [#allocation4], %s1538_s29 }
 0x21e   : > { %p1683_p5 = pnand %p1687_p3, %p1986_p12 }
 0x220   : > { %p1684_p6 = pneg %p1683_p5 }
 0x222   : > { %1835 = dma.done.wait (%p1684_p6), %s1539_s7, 2048  }
 0x223   : > { %1837 = vsyncadd (%p1684_p6), %s1539_s7, 4294965248  ;;  %s21_s25 = sadd.s32 1, %s1868_s25   ;;  %s2473_s9 = sld [smem:[#allocation10_spill]] }
 0x224   : > { %p18_p7 = scmp.ge.s32.totalorder %s21_s25, 6   ;;  %s2474_s17 = sld [smem:[#allocation11_spill]] }
 0x225   : > { %s2475_s18 = smov %s1844_s19  ;;  %s2476_s19 = smov %s1848_s20 }
 0x226   : > { %s2477_s20 = smov %s1993_s14  ;;  %s2478_s21 = smov %s1860_s23 }
 0x227   : > { %s2479_s22 = smov %s1864_s24  ;;  %20 = sbr.rel (!%p18_p7) target bundleno = 7 (0x7), region = 93 }
 0x229   : > { %s2480_s23 = smov %s2473_s9 }
 0x22a   : > { %s2481_s24 = smov %s2474_s17 }
 0x22c   :  { %1545 = vsyncpa [#allocation3], 1 }
 0x22d   :  { %1547 = vsyncpa [#allocation3 + $0x1], 1 }
 0x22e   :  { %1548 = vsyncpa [#allocation4], 1 }
 0x22f   :  { %1550 = vsyncpa [#allocation4 + $0x1], 1 }

</bundles_post_ra>
